<compile_context>
chip_gen: v7x
topology: tpu7x:2x2x1
jax: 0.10.0
libtpu: 0.0.40
codegen_flags: <defaults>
</compile_context>

<pallas_src>
import functools
import math

import jax
import jax.numpy as jnp
from jax.experimental import pallas as pl
from jax.experimental.pallas import tpu as pltpu

EPS = 1e-6  # LayerNorm eps in the Annotated Transformer


def _layernorm(x, a, b):
    # Matches torch: mean over last dim, std with Bessel correction (unbiased),
    # and a_2 * (x - mean) / (std + eps) + b_2   (note: eps added to std).
    # Single-pass moments: the two cross-lane reductions are independent.
    d = x.shape[-1]
    s1 = jnp.sum(x, axis=-1, keepdims=True)
    s2 = jnp.sum(x * x, axis=-1, keepdims=True)
    mean = s1 * (1.0 / d)
    var = (s2 - d * mean * mean) * (1.0 / (d - 1))
    std = jnp.sqrt(jnp.maximum(var, 0.0))
    return a * (x - mean) / (std + EPS) + b


# --------------------------------------------------------------------------
# Fused encoder-stack kernel: grid = (batch_tile, layer)
# --------------------------------------------------------------------------
def encoder_stack_kernel(x_ref, bias_ref,
                         wqkv_ref, bqkv_ref, wo_ref, bo_ref,
                         ln1a_ref, ln1b_ref, ln2a_ref, ln2b_ref,
                         w1_ref, b1_ref, w2_ref, b2_ref,
                         na_ref, nb_ref,
                         out_ref,
                         x_scr, *, num_heads):
    layer = pl.program_id(1)
    n_layers = pl.num_programs(1)

    Bb, S, D = x_ref.shape
    H = num_heads
    dk = D // H
    R = Bb * S
    cdt = wqkv_ref.dtype                       # matmul operand dtype (f32 / bf16)

    # Load the input tile into the resident VMEM scratch once per batch tile;
    # subsequent layer iterations reuse it (no HBM round-trips).
    @pl.when(layer == 0)
    def _():
        x_scr[...] = x_ref[...].reshape(R, D).astype(jnp.float32)

    x = x_scr[...]                             # (R, D) f32 residual stream
    # Hoist the additive key-mask bias broadcast out of the head loop.
    bias = jnp.broadcast_to(bias_ref[...], (Bb, S, S))        # 0 / -1e9

    # ---- sublayer 1: x + self_attn(LayerNorm(x))  (dropout = identity) ----
    xn = _layernorm(x, ln1a_ref[0], ln1b_ref[0])
    # Fused QKV projection: one (Bb*S, D) @ (D, 3D) MXU matmul, f32 accumulation.
    # 1/sqrt(dk) is already folded into the Q columns of wqkv / bqkv.
    qkv = jnp.dot(xn.astype(cdt), wqkv_ref[0],
                  preferred_element_type=jnp.float32) + bqkv_ref[0]    # (R, 3D)

    head_outs = []
    for h in range(H):
        qh = qkv[:, 0 * D + h * dk:0 * D + (h + 1) * dk].reshape(Bb, S, dk).astype(cdt)
        kh = qkv[:, 1 * D + h * dk:1 * D + (h + 1) * dk].reshape(Bb, S, dk).astype(cdt)
        vh = qkv[:, 2 * D + h * dk:2 * D + (h + 1) * dk].reshape(Bb, S, dk).astype(cdt)
        # Q @ K^T batched over the Bb sequences; contracting last dims avoids
        # an explicit XLU transpose of K.
        s = jnp.einsum('bqd,bkd->bqk', qh, kh,
                       preferred_element_type=jnp.float32) + bias       # (Bb,S,S)
        s = s - jnp.max(s, axis=-1, keepdims=True)
        p = jnp.exp(s)
        p = p * pl.reciprocal(jnp.sum(p, axis=-1, keepdims=True), approx=True)
        oh = jnp.einsum('bqk,bkd->bqd', p.astype(cdt), vh,
                        preferred_element_type=jnp.float32)             # (Bb,S,dk)
        head_outs.append(oh)
    # One lane-dense (R, D) slab feeding Wo (no masked per-head partial stores).
    attn_in = jnp.concatenate(head_outs, axis=-1).reshape(R, D)

    attn = jnp.dot(attn_in.astype(cdt), wo_ref[0],
                   preferred_element_type=jnp.float32) + bo_ref[0]
    x = x + attn

    # ---- sublayer 2: x + FFN(LayerNorm(x))  (dropout = identity) ----
    xn2 = _layernorm(x, ln2a_ref[0], ln2b_ref[0])
    h1 = jnp.maximum(
        jnp.dot(xn2.astype(cdt), w1_ref[0],
                preferred_element_type=jnp.float32) + b1_ref[0], 0.0)
    ff = jnp.dot(h1.astype(cdt), w2_ref[0],
                 preferred_element_type=jnp.float32) + b2_ref[0]
    x = x + ff
    x_scr[...] = x

    # Final LayerNorm fused into the last layer iteration.
    @pl.when(layer == n_layers - 1)
    def _():
        y = _layernorm(x, na_ref[...], nb_ref[...])
        out_ref[...] = y.reshape(Bb, S, D).astype(out_ref.dtype)


# --------------------------------------------------------------------------
# Wrapper (pallas_call plumbing)
# --------------------------------------------------------------------------
def _wspec(*shape):
    """BlockSpec for a layer-stacked weight (L, *shape): pick layer `l`."""
    nz = (0,) * len(shape)
    return pl.BlockSpec((1,) + tuple(shape), lambda b, l: (l,) + nz)


def _vmem_limit_bytes():
    # Generation-aware scoped-VMEM budget: ~100 MiB on v5e/v6e (128 MiB phys),
    # ~56 MiB on v7x (64 MiB phys).  Fallback is the conservative v7x number.
    try:
        cap = pltpu.get_tpu_info().vmem_capacity_bytes
    except Exception:
        cap = 64 * 1024 * 1024
    return int(min(cap - 8 * 1024 * 1024, 100 * 1024 * 1024))


def _default_block_b(B, S):
    # Target >= 256 rows per projection matmul (fills the 256-row MXU on
    # v6e/v7x) while bounding the residual / score VMEM footprint.
    return max(1, min(B, 256 // max(S, 1), 64))


def encoder_forward(x, mask, packed, num_heads, block_b=None):
    """Encoder.forward: for layer in layers: x = layer(x, mask); return norm(x)."""
    B, S, D = x.shape
    L = packed["wqkv"].shape[0]
    d_ff = packed["w1"].shape[-1]

    if block_b is None:
        block_b = _default_block_b(B, S)
    block_b = max(1, min(block_b, B))
    nb = pl.cdiv(B, block_b)
    Bp = nb * block_b

    # Additive key-mask bias: 0 where attend, -1e9 where masked (one VPU add
    # per score tile instead of compare+select).
    bias = ((mask - 1.0) * 1e9).astype(jnp.float32)          # (B, 1, S)
    x_in = x
    if Bp != B:                                              # pad batch to tile
        x_in = jnp.concatenate([x, jnp.zeros((Bp - B, S, D), x.dtype)], axis=0)
        bias = jnp.concatenate([bias, jnp.zeros((Bp - B, 1, S), jnp.float32)], axis=0)

    kernel = functools.partial(encoder_stack_kernel, num_heads=num_heads)
    out = pl.pallas_call(
        kernel,
        out_shape=jax.ShapeDtypeStruct((Bp, S, D), x.dtype),
        grid=(nb, L),
        in_specs=[
            pl.BlockSpec((block_b, S, D), lambda b, l: (b, 0, 0)),   # x
            pl.BlockSpec((block_b, 1, S), lambda b, l: (b, 0, 0)),   # mask bias
            _wspec(D, 3 * D), _wspec(1, 3 * D),                      # wqkv, bqkv
            _wspec(D, D), _wspec(1, D),                              # wo, bo
            _wspec(1, D), _wspec(1, D),                              # ln1 a, b
            _wspec(1, D), _wspec(1, D),                              # ln2 a, b
            _wspec(D, d_ff), _wspec(1, d_ff),                        # w1, b1
            _wspec(d_ff, D), _wspec(1, D),                           # w2, b2
            pl.BlockSpec((1, D), lambda b, l: (0, 0)),               # final norm a
            pl.BlockSpec((1, D), lambda b, l: (0, 0)),               # final norm b
        ],
        out_specs=pl.BlockSpec((block_b, S, D), lambda b, l: (b, 0, 0)),
        scratch_shapes=[
            pltpu.VMEM((block_b * S, D), jnp.float32),   # resident residual stream
        ],
        compiler_params=pltpu.CompilerParams(
            dimension_semantics=("parallel", "arbitrary"),
            vmem_limit_bytes=_vmem_limit_bytes()),
    )(x_in, bias,
      packed["wqkv"], packed["bqkv"], packed["wo"], packed["bo"],
      packed["ln1a"], packed["ln1b"], packed["ln2a"], packed["ln2b"],
      packed["w1"], packed["b1"], packed["w2"], packed["b2"],
      packed["norm_a"], packed["norm_b"])
    return out[:B] if Bp != B else out


def pack_params(params, compute_dtype=jnp.float32):
    """One-time repack of PyTorch-style per-layer weights into layer-stacked,
    MXU-friendly tensors.  The 1/sqrt(d_k) softmax scale is folded into the Q
    projection.  Matmul weights are cast to `compute_dtype` (use jnp.bfloat16
    on v5e/v6e/v7x); biases / LayerNorm params stay f32."""
    layers = params["layers"]
    L = len(layers)
    D = layers[0]["wq"].shape[0]
    H = params["num_heads"]
    scale = 1.0 / math.sqrt(D // H)

    def stack(name):
        return jnp.stack([p[name] for p in layers])

    wqkv = jnp.stack([jnp.concatenate([p["wq"] * scale, p["wk"], p["wv"]], axis=1)
                      for p in layers]).astype(compute_dtype)            # (L, D, 3D)
    bqkv = jnp.stack([jnp.concatenate([p["bq"] * scale, p["bk"], p["bv"]])[None, :]
                      for p in layers]).astype(jnp.float32)              # (L, 1, 3D)
    return dict(
        wqkv=wqkv, bqkv=bqkv,
        wo=stack("wo").astype(compute_dtype),
        bo=stack("bo").reshape(L, 1, D).astype(jnp.float32),
        ln1a=stack("ln1a").reshape(L, 1, D).astype(jnp.float32),
        ln1b=stack("ln1b").reshape(L, 1, D).astype(jnp.float32),
        ln2a=stack("ln2a").reshape(L, 1, D).astype(jnp.float32),
        ln2b=stack("ln2b").reshape(L, 1, D).astype(jnp.float32),
        w1=stack("w1").astype(compute_dtype),
        b1=stack("b1")[:, None, :].astype(jnp.float32),
        w2=stack("w2").astype(compute_dtype),
        b2=stack("b2").reshape(L, 1, D).astype(jnp.float32),
        norm_a=params["norm_a"].reshape(1, D).astype(jnp.float32),
        norm_b=params["norm_b"].reshape(1, D).astype(jnp.float32),
    )


# --------------------------------------------------------------------------
# Deterministic parameter init (synthetic; mirrors the module's shapes)
# --------------------------------------------------------------------------
def init_params(key, N, d_model, num_heads, d_ff):
    layers = []
    for _ in range(N):
        key, *ks = jax.random.split(key, 13)
        w = lambda k, shape, s=0.05: (s * jax.random.normal(k, shape)).astype(jnp.float32)
        layers.append(dict(
            wq=w(ks[0], (d_model, d_model)), bq=w(ks[1], (d_model,), 0.02),
            wk=w(ks[2], (d_model, d_model)), bk=w(ks[3], (d_model,), 0.02),
            wv=w(ks[4], (d_model, d_model)), bv=w(ks[5], (d_model,), 0.02),
            wo=w(ks[6], (d_model, d_model)), bo=w(ks[7], (d_model,), 0.02),
            w1=w(ks[8], (d_model, d_ff)),    b1=w(ks[9], (d_ff,), 0.02),
            w2=w(ks[10], (d_ff, d_model)),   b2=w(ks[11], (d_model,), 0.02),
            ln1a=jnp.ones((d_model,), jnp.float32), ln1b=jnp.zeros((d_model,), jnp.float32),
            ln2a=jnp.ones((d_model,), jnp.float32), ln2b=jnp.zeros((d_model,), jnp.float32),
        ))
    return dict(layers=layers, num_heads=num_heads,
                norm_a=jnp.ones((d_model,), jnp.float32),
                norm_b=jnp.zeros((d_model,), jnp.float32))


# --------------------------------------------------------------------------
# Pure-JAX reference (for a correctness check)
# --------------------------------------------------------------------------
def ref_encoder(x, mask, params):
    def ln(x, a, b):
        d = x.shape[-1]
        mean = x.mean(-1, keepdims=True)
        var = ((x - mean) ** 2).sum(-1, keepdims=True) / (d - 1)
        return a * (x - mean) / (jnp.sqrt(var) + EPS) + b

    B, S, D = x.shape
    H = params["num_heads"]
    d_k = D // H
    for p in params["layers"]:
        xn = ln(x, p["ln1a"], p["ln1b"])
        q = (xn @ p["wq"] + p["bq"]).reshape(B, S, H, d_k).transpose(0, 2, 1, 3)
        k = (xn @ p["wk"] + p["bk"]).reshape(B, S, H, d_k).transpose(0, 2, 1, 3)
        v = (xn @ p["wv"] + p["bv"]).reshape(B, S, H, d_k).transpose(0, 2, 1, 3)
        s = jnp.einsum("bhqd,bhkd->bhqk", q, k) / jnp.sqrt(jnp.float32(d_k))
        s = jnp.where(mask[:, None, :, :] == 0.0, -1e9, s)
        pa = jax.nn.softmax(s, axis=-1)
        o = jnp.einsum("bhqk,bhkd->bhqd", pa, v).transpose(0, 2, 1, 3).reshape(B, S, D)
        x = x + (o @ p["wo"] + p["bo"])
        xn2 = ln(x, p["ln2a"], p["ln2b"])
        x = x + (jnp.maximum(xn2 @ p["w1"] + p["b1"], 0.0) @ p["w2"] + p["b2"])
    return ln(x, params["norm_a"], params["norm_b"])


# --------------------------------------------------------------------------
if __name__ == "__main__":
    B, S, D, H, DFF, N = 2, 8, 32, 4, 64, 2
    key = jax.random.PRNGKey(0)
    kx, kp = jax.random.split(key)
    x = jax.random.normal(kx, (B, S, D), dtype=jnp.float32)
    lengths = jnp.array([S, 5])
    mask = (jnp.arange(S)[None, :] < lengths[:, None]).astype(jnp.float32)[:, None, :]

    params = init_params(kp, N, D, H, DFF)
    ref = ref_encoder(x, mask, params)

    # f32 operands (tight check against the pure-JAX reference; slack for the
    # approx-EUP softmax reciprocal).
    packed_f32 = pack_params(params, jnp.float32)       # packed once, not per call
    out = jax.block_until_ready(encoder_forward(x, mask, packed_f32, H))
    assert out.shape == (B, S, D)
    assert jnp.allclose(out, ref, atol=1e-2, rtol=1e-2), \
        float(jnp.max(jnp.abs(out - ref)))

    # bf16 matmul operands with f32 accumulation (the v5e/v6e/v7x config);
    # looser tolerance against the f32 reference due to operand quantization.
    packed_bf16 = pack_params(params, jnp.bfloat16)
    out_bf16 = jax.block_until_ready(encoder_forward(x, mask, packed_bf16, H))
    assert jnp.allclose(out_bf16, ref, atol=5e-2, rtol=5e-2), \
        float(jnp.max(jnp.abs(out_bf16 - ref)))

    print("KERNEL_OK")
</pallas_src>

<mosaic_0001>
module attributes {stable_mosaic.version = 11 : i64} {
  func.func @encoder_stack_kernel(%arg0: i32, %arg1: i32, %arg2: memref<2x8x32xf32, #tpu.memory_space<vmem>>, %arg3: memref<2x1x8xf32, #tpu.memory_space<vmem>>, %arg4: memref<1x32x96xf32, #tpu.memory_space<vmem>>, %arg5: memref<1x1x96xf32, #tpu.memory_space<vmem>>, %arg6: memref<1x32x32xf32, #tpu.memory_space<vmem>>, %arg7: memref<1x1x32xf32, #tpu.memory_space<vmem>>, %arg8: memref<1x1x32xf32, #tpu.memory_space<vmem>>, %arg9: memref<1x1x32xf32, #tpu.memory_space<vmem>>, %arg10: memref<1x1x32xf32, #tpu.memory_space<vmem>>, %arg11: memref<1x1x32xf32, #tpu.memory_space<vmem>>, %arg12: memref<1x32x64xf32, #tpu.memory_space<vmem>>, %arg13: memref<1x1x64xf32, #tpu.memory_space<vmem>>, %arg14: memref<1x64x32xf32, #tpu.memory_space<vmem>>, %arg15: memref<1x1x32xf32, #tpu.memory_space<vmem>>, %arg16: memref<1x32xf32, #tpu.memory_space<vmem>>, %arg17: memref<1x32xf32, #tpu.memory_space<vmem>>, %arg18: memref<2x8x32xf32, #tpu.memory_space<vmem>>, %arg19: memref<16x32xf32, #tpu.memory_space<vmem>>) attributes {dimension_semantics = [#tpu.dimension_semantics<parallel>, #tpu.dimension_semantics<arbitrary>], iteration_bounds = array<i64: 1, 2>, scalar_prefetch = 0 : i64, scratch_operands = 1 : i64, tpu.core_type = #tpu.core_type<tc>, window_params = [{transform_indices = @transform_0, window_bounds = array<i64: 2, 8, 32>}, {transform_indices = @transform_1, window_bounds = array<i64: 2, 1, 8>}, {transform_indices = @transform_2, window_bounds = array<i64: 1, 32, 96>}, {transform_indices = @transform_3, window_bounds = array<i64: 1, 1, 96>}, {transform_indices = @transform_4, window_bounds = array<i64: 1, 32, 32>}, {transform_indices = @transform_5, window_bounds = array<i64: 1, 1, 32>}, {transform_indices = @transform_6, window_bounds = array<i64: 1, 1, 32>}, {transform_indices = @transform_7, window_bounds = array<i64: 1, 1, 32>}, {transform_indices = @transform_8, window_bounds = array<i64: 1, 1, 32>}, {transform_indices = @transform_9, window_bounds = array<i64: 1, 1, 32>}, {transform_indices = @transform_10, window_bounds = array<i64: 1, 32, 64>}, {transform_indices = @transform_11, window_bounds = array<i64: 1, 1, 64>}, {transform_indices = @transform_12, window_bounds = array<i64: 1, 64, 32>}, {transform_indices = @transform_13, window_bounds = array<i64: 1, 1, 32>}, {pipeline_mode = #tpu.pipeline_mode<synchronous>, transform_indices = @transform_14, window_bounds = array<i64: 1, 32>}, {pipeline_mode = #tpu.pipeline_mode<synchronous>, transform_indices = @transform_15, window_bounds = array<i64: 1, 32>}, {transform_indices = @transform_16, window_bounds = array<i64: 2, 8, 32>}]} {
    %c0_i32 = arith.constant 0 : i32
    %0 = arith.cmpi eq, %arg1, %c0_i32 : i32
    %1 = arith.extui %0 : i1 to i32
    %c0_i32_0 = arith.constant 0 : i32
    %2 = arith.cmpi ne, %1, %c0_i32_0 : i32
    scf.if %2 {
      %c0_78 = arith.constant 0 : index
      %c0_79 = arith.constant 0 : index
      %c0_80 = arith.constant 0 : index
      %181 = vector.load %arg2[%c0_78, %c0_79, %c0_80] : memref<2x8x32xf32, #tpu.memory_space<vmem>>, vector<2x8x32xf32>
      %182 = vector.shape_cast %181 : vector<2x8x32xf32> to vector<16x32xf32>
      %c0_81 = arith.constant 0 : index
      %c0_82 = arith.constant 0 : index
      %183 = vector.load %arg19[%c0_81, %c0_82] : memref<16x32xf32, #tpu.memory_space<vmem>>, vector<16x32xf32>
      tpu.vector_store %arg19[%c0_81, %c0_82], %182 {strides = array<i32>} : memref<16x32xf32, #tpu.memory_space<vmem>>, vector<16x32xf32>,
    } else {
    }
    %c0 = arith.constant 0 : index
    %c0_1 = arith.constant 0 : index
    %3 = vector.load %arg19[%c0, %c0_1] : memref<16x32xf32, #tpu.memory_space<vmem>>, vector<16x32xf32>
    %c0_2 = arith.constant 0 : index
    %c0_3 = arith.constant 0 : index
    %c0_4 = arith.constant 0 : index
    %4 = vector.load %arg3[%c0_2, %c0_3, %c0_4] : memref<2x1x8xf32, #tpu.memory_space<vmem>>, vector<2x1x8xf32>
    %5 = vector.shape_cast %4 : vector<2x1x8xf32> to vector<2x1x8xf32>
    %6 = vector.broadcast %5 : vector<2x1x8xf32> to vector<2x8x8xf32>
    %c0_5 = arith.constant 0 : index
    %c0_6 = arith.constant 0 : index
    %c0_7 = arith.constant 0 : index
    %7 = vector.load %arg8[%c0_5, %c0_6, %c0_7] : memref<1x1x32xf32, #tpu.memory_space<vmem>>, vector<1x1x32xf32>
    %8 = vector.shape_cast %7 : vector<1x1x32xf32> to vector<1x32xf32>
    %c0_8 = arith.constant 0 : index
    %c0_9 = arith.constant 0 : index
    %c0_10 = arith.constant 0 : index
    %9 = vector.load %arg9[%c0_8, %c0_9, %c0_10] : memref<1x1x32xf32, #tpu.memory_space<vmem>>, vector<1x1x32xf32>
    %10 = vector.shape_cast %9 : vector<1x1x32xf32> to vector<1x32xf32>
    %cst = arith.constant dense<0.000000e+00> : vector<16xf32>
    %11 = vector.multi_reduction <add>, %3, %cst [1] : vector<16x32xf32> to vector<16xf32>
    %12 = vector.shape_cast %11 : vector<16xf32> to vector<16x1xf32>
    %13 = arith.mulf %3, %3 : vector<16x32xf32>
    %cst_11 = arith.constant dense<0.000000e+00> : vector<16xf32>
    %14 = vector.multi_reduction <add>, %13, %cst_11 [1] : vector<16x32xf32> to vector<16xf32>
    %15 = vector.shape_cast %14 : vector<16xf32> to vector<16x1xf32>
    %cst_12 = arith.constant 3.125000e-02 : f32
    %16 = vector.broadcast %cst_12 : f32 to vector<16x1xf32>
    %17 = arith.mulf %12, %16 : vector<16x1xf32>
    %cst_13 = arith.constant 3.200000e+01 : f32
    %18 = vector.broadcast %cst_13 : f32 to vector<16x1xf32>
    %19 = arith.mulf %18, %17 : vector<16x1xf32>
    %20 = arith.mulf %19, %17 : vector<16x1xf32>
    %21 = arith.subf %15, %20 : vector<16x1xf32>
    %cst_14 = arith.constant 0.0322580636 : f32
    %22 = vector.broadcast %cst_14 : f32 to vector<16x1xf32>
    %23 = arith.mulf %21, %22 : vector<16x1xf32>
    %cst_15 = arith.constant 0.000000e+00 : f32
    %24 = vector.broadcast %cst_15 : f32 to vector<16x1xf32>
    %25 = arith.maximumf %23, %24 : vector<16x1xf32>
    %26 = math.sqrt %25 : vector<16x1xf32>
    %27 = vector.broadcast %17 : vector<16x1xf32> to vector<16x32xf32>
    %28 = arith.subf %3, %27 : vector<16x32xf32>
    %29 = vector.broadcast %8 : vector<1x32xf32> to vector<16x32xf32>
    %30 = arith.mulf %29, %28 : vector<16x32xf32>
    %cst_16 = arith.constant 9.99999997E-7 : f32
    %31 = vector.broadcast %cst_16 : f32 to vector<16x1xf32>
    %32 = arith.addf %26, %31 : vector<16x1xf32>
    %33 = vector.broadcast %32 : vector<16x1xf32> to vector<16x32xf32>
    %34 = arith.divf %30, %33 : vector<16x32xf32>
    %35 = vector.broadcast %10 : vector<1x32xf32> to vector<16x32xf32>
    %36 = arith.addf %34, %35 : vector<16x32xf32>
    %c0_17 = arith.constant 0 : index
    %c0_18 = arith.constant 0 : index
    %c0_19 = arith.constant 0 : index
    %37 = vector.load %arg4[%c0_17, %c0_18, %c0_19] : memref<1x32x96xf32, #tpu.memory_space<vmem>>, vector<1x32x96xf32>
    %38 = vector.shape_cast %37 : vector<1x32x96xf32> to vector<32x96xf32>
    %cst_20 = arith.constant dense<0.000000e+00> : vector<16x96xf32>
    %39 = tpu.matmul %36, %38, %cst_20 {dimension_numbers = #tpu.dot_dimension_numbers<[1], [0], [0], [1], [0, 0, 1, 1], [], []>} : vector<16x32xf32>, vector<32x96xf32>, vector<16x96xf32> -> vector<16x96xf32>
    %c0_21 = arith.constant 0 : index
    %c0_22 = arith.constant 0 : index
    %c0_23 = arith.constant 0 : index
    %40 = vector.load %arg5[%c0_21, %c0_22, %c0_23] : memref<1x1x96xf32, #tpu.memory_space<vmem>>, vector<1x1x96xf32>
    %41 = vector.shape_cast %40 : vector<1x1x96xf32> to vector<1x96xf32>
    %42 = vector.broadcast %41 : vector<1x96xf32> to vector<16x96xf32>
    %43 = arith.addf %39, %42 : vector<16x96xf32>
    %44 = vector.extract_strided_slice %43 {offsets = [0, 0], sizes = [16, 8], strides = [1, 1]} : vector<16x96xf32> to vector<16x8xf32>
    %45 = vector.shape_cast %44 : vector<16x8xf32> to vector<2x8x8xf32>
    %46 = vector.extract_strided_slice %43 {offsets = [0, 32], sizes = [16, 8], strides = [1, 1]} : vector<16x96xf32> to vector<16x8xf32>
    %47 = vector.shape_cast %46 : vector<16x8xf32> to vector<2x8x8xf32>
    %48 = vector.extract_strided_slice %43 {offsets = [0, 64], sizes = [16, 8], strides = [1, 1]} : vector<16x96xf32> to vector<16x8xf32>
    %49 = vector.shape_cast %48 : vector<16x8xf32> to vector<2x8x8xf32>
    "tpu.trace_start"() <{level = 10 : i32, message = "bqd,bkd->bqk"}> : () -> ()
    %cst_24 = arith.constant dense<0.000000e+00> : vector<2x8x8xf32>
    %50 = tpu.matmul %45, %47, %cst_24 {dimension_numbers = #tpu.dot_dimension_numbers<[2], [2], [1], [1], [0, 0, 0, 1, 1, 1], [0], [0]>} : vector<2x8x8xf32>, vector<2x8x8xf32>, vector<2x8x8xf32> -> vector<2x8x8xf32>
    "tpu.trace_stop"() : () -> ()
    %51 = arith.addf %50, %6 : vector<2x8x8xf32>
    %cst_25 = arith.constant dense<0xFF800000> : vector<2x8xf32>
    %52 = vector.multi_reduction <maximumf>, %51, %cst_25 [2] : vector<2x8x8xf32> to vector<2x8xf32>
    %53 = vector.shape_cast %52 : vector<2x8xf32> to vector<2x8x1xf32>
    %54 = vector.broadcast %53 : vector<2x8x1xf32> to vector<2x8x8xf32>
    %55 = arith.subf %51, %54 : vector<2x8x8xf32>
    %56 = math.exp %55 : vector<2x8x8xf32>
    %cst_26 = arith.constant dense<0.000000e+00> : vector<2x8xf32>
    %57 = vector.multi_reduction <add>, %56, %cst_26 [2] : vector<2x8x8xf32> to vector<2x8xf32>
    %58 = vector.shape_cast %57 : vector<2x8xf32> to vector<2x8x1xf32>
    %59 = tpu.reciprocal %58 {approx = true} : vector<2x8x1xf32> -> vector<2x8x1xf32>
    %60 = vector.broadcast %59 : vector<2x8x1xf32> to vector<2x8x8xf32>
    %61 = arith.mulf %56, %60 : vector<2x8x8xf32>
    "tpu.trace_start"() <{level = 10 : i32, message = "bqk,bkd->bqd"}> : () -> ()
    %cst_27 = arith.constant dense<0.000000e+00> : vector<2x8x8xf32>
    %62 = tpu.matmul %61, %49, %cst_27 {dimension_numbers = #tpu.dot_dimension_numbers<[2], [1], [1], [2], [0, 0, 0, 1, 1, 2], [0], [0]>} : vector<2x8x8xf32>, vector<2x8x8xf32>, vector<2x8x8xf32> -> vector<2x8x8xf32>
    "tpu.trace_stop"() : () -> ()
    %63 = vector.extract_strided_slice %43 {offsets = [0, 8], sizes = [16, 8], strides = [1, 1]} : vector<16x96xf32> to vector<16x8xf32>
    %64 = vector.shape_cast %63 : vector<16x8xf32> to vector<2x8x8xf32>
    %65 = vector.extract_strided_slice %43 {offsets = [0, 40], sizes = [16, 8], strides = [1, 1]} : vector<16x96xf32> to vector<16x8xf32>
    %66 = vector.shape_cast %65 : vector<16x8xf32> to vector<2x8x8xf32>
    %67 = vector.extract_strided_slice %43 {offsets = [0, 72], sizes = [16, 8], strides = [1, 1]} : vector<16x96xf32> to vector<16x8xf32>
    %68 = vector.shape_cast %67 : vector<16x8xf32> to vector<2x8x8xf32>
    "tpu.trace_start"() <{level = 10 : i32, message = "bqd,bkd->bqk"}> : () -> ()
    %cst_28 = arith.constant dense<0.000000e+00> : vector<2x8x8xf32>
    %69 = tpu.matmul %64, %66, %cst_28 {dimension_numbers = #tpu.dot_dimension_numbers<[2], [2], [1], [1], [0, 0, 0, 1, 1, 1], [0], [0]>} : vector<2x8x8xf32>, vector<2x8x8xf32>, vector<2x8x8xf32> -> vector<2x8x8xf32>
    "tpu.trace_stop"() : () -> ()
    %70 = arith.addf %69, %6 : vector<2x8x8xf32>
    %cst_29 = arith.constant dense<0xFF800000> : vector<2x8xf32>
    %71 = vector.multi_reduction <maximumf>, %70, %cst_29 [2] : vector<2x8x8xf32> to vector<2x8xf32>
    %72 = vector.shape_cast %71 : vector<2x8xf32> to vector<2x8x1xf32>
    %73 = vector.broadcast %72 : vector<2x8x1xf32> to vector<2x8x8xf32>
    %74 = arith.subf %70, %73 : vector<2x8x8xf32>
    %75 = math.exp %74 : vector<2x8x8xf32>
    %cst_30 = arith.constant dense<0.000000e+00> : vector<2x8xf32>
    %76 = vector.multi_reduction <add>, %75, %cst_30 [2] : vector<2x8x8xf32> to vector<2x8xf32>
    %77 = vector.shape_cast %76 : vector<2x8xf32> to vector<2x8x1xf32>
    %78 = tpu.reciprocal %77 {approx = true} : vector<2x8x1xf32> -> vector<2x8x1xf32>
    %79 = vector.broadcast %78 : vector<2x8x1xf32> to vector<2x8x8xf32>
    %80 = arith.mulf %75, %79 : vector<2x8x8xf32>
    "tpu.trace_start"() <{level = 10 : i32, message = "bqk,bkd->bqd"}> : () -> ()
    %cst_31 = arith.constant dense<0.000000e+00> : vector<2x8x8xf32>
    %81 = tpu.matmul %80, %68, %cst_31 {dimension_numbers = #tpu.dot_dimension_numbers<[2], [1], [1], [2], [0, 0, 0, 1, 1, 2], [0], [0]>} : vector<2x8x8xf32>, vector<2x8x8xf32>, vector<2x8x8xf32> -> vector<2x8x8xf32>
    "tpu.trace_stop"() : () -> ()
    %82 = vector.extract_strided_slice %43 {offsets = [0, 16], sizes = [16, 8], strides = [1, 1]} : vector<16x96xf32> to vector<16x8xf32>
    %83 = vector.shape_cast %82 : vector<16x8xf32> to vector<2x8x8xf32>
    %84 = vector.extract_strided_slice %43 {offsets = [0, 48], sizes = [16, 8], strides = [1, 1]} : vector<16x96xf32> to vector<16x8xf32>
    %85 = vector.shape_cast %84 : vector<16x8xf32> to vector<2x8x8xf32>
    %86 = vector.extract_strided_slice %43 {offsets = [0, 80], sizes = [16, 8], strides = [1, 1]} : vector<16x96xf32> to vector<16x8xf32>
    %87 = vector.shape_cast %86 : vector<16x8xf32> to vector<2x8x8xf32>
    "tpu.trace_start"() <{level = 10 : i32, message = "bqd,bkd->bqk"}> : () -> ()
    %cst_32 = arith.constant dense<0.000000e+00> : vector<2x8x8xf32>
    %88 = tpu.matmul %83, %85, %cst_32 {dimension_numbers = #tpu.dot_dimension_numbers<[2], [2], [1], [1], [0, 0, 0, 1, 1, 1], [0], [0]>} : vector<2x8x8xf32>, vector<2x8x8xf32>, vector<2x8x8xf32> -> vector<2x8x8xf32>
    "tpu.trace_stop"() : () -> ()
    %89 = arith.addf %88, %6 : vector<2x8x8xf32>
    %cst_33 = arith.constant dense<0xFF800000> : vector<2x8xf32>
    %90 = vector.multi_reduction <maximumf>, %89, %cst_33 [2] : vector<2x8x8xf32> to vector<2x8xf32>
    %91 = vector.shape_cast %90 : vector<2x8xf32> to vector<2x8x1xf32>
    %92 = vector.broadcast %91 : vector<2x8x1xf32> to vector<2x8x8xf32>
    %93 = arith.subf %89, %92 : vector<2x8x8xf32>
    %94 = math.exp %93 : vector<2x8x8xf32>
    %cst_34 = arith.constant dense<0.000000e+00> : vector<2x8xf32>
    %95 = vector.multi_reduction <add>, %94, %cst_34 [2] : vector<2x8x8xf32> to vector<2x8xf32>
    %96 = vector.shape_cast %95 : vector<2x8xf32> to vector<2x8x1xf32>
    %97 = tpu.reciprocal %96 {approx = true} : vector<2x8x1xf32> -> vector<2x8x1xf32>
    %98 = vector.broadcast %97 : vector<2x8x1xf32> to vector<2x8x8xf32>
    %99 = arith.mulf %94, %98 : vector<2x8x8xf32>
    "tpu.trace_start"() <{level = 10 : i32, message = "bqk,bkd->bqd"}> : () -> ()
    %cst_35 = arith.constant dense<0.000000e+00> : vector<2x8x8xf32>
    %100 = tpu.matmul %99, %87, %cst_35 {dimension_numbers = #tpu.dot_dimension_numbers<[2], [1], [1], [2], [0, 0, 0, 1, 1, 2], [0], [0]>} : vector<2x8x8xf32>, vector<2x8x8xf32>, vector<2x8x8xf32> -> vector<2x8x8xf32>
    "tpu.trace_stop"() : () -> ()
    %101 = vector.extract_strided_slice %43 {offsets = [0, 24], sizes = [16, 8], strides = [1, 1]} : vector<16x96xf32> to vector<16x8xf32>
    %102 = vector.shape_cast %101 : vector<16x8xf32> to vector<2x8x8xf32>
    %103 = vector.extract_strided_slice %43 {offsets = [0, 56], sizes = [16, 8], strides = [1, 1]} : vector<16x96xf32> to vector<16x8xf32>
    %104 = vector.shape_cast %103 : vector<16x8xf32> to vector<2x8x8xf32>
    %105 = vector.extract_strided_slice %43 {offsets = [0, 88], sizes = [16, 8], strides = [1, 1]} : vector<16x96xf32> to vector<16x8xf32>
    %106 = vector.shape_cast %105 : vector<16x8xf32> to vector<2x8x8xf32>
    "tpu.trace_start"() <{level = 10 : i32, message = "bqd,bkd->bqk"}> : () -> ()
    %cst_36 = arith.constant dense<0.000000e+00> : vector<2x8x8xf32>
    %107 = tpu.matmul %102, %104, %cst_36 {dimension_numbers = #tpu.dot_dimension_numbers<[2], [2], [1], [1], [0, 0, 0, 1, 1, 1], [0], [0]>} : vector<2x8x8xf32>, vector<2x8x8xf32>, vector<2x8x8xf32> -> vector<2x8x8xf32>
    "tpu.trace_stop"() : () -> ()
    %108 = arith.addf %107, %6 : vector<2x8x8xf32>
    %cst_37 = arith.constant dense<0xFF800000> : vector<2x8xf32>
    %109 = vector.multi_reduction <maximumf>, %108, %cst_37 [2] : vector<2x8x8xf32> to vector<2x8xf32>
    %110 = vector.shape_cast %109 : vector<2x8xf32> to vector<2x8x1xf32>
    %111 = vector.broadcast %110 : vector<2x8x1xf32> to vector<2x8x8xf32>
    %112 = arith.subf %108, %111 : vector<2x8x8xf32>
    %113 = math.exp %112 : vector<2x8x8xf32>
    %cst_38 = arith.constant dense<0.000000e+00> : vector<2x8xf32>
    %114 = vector.multi_reduction <add>, %113, %cst_38 [2] : vector<2x8x8xf32> to vector<2x8xf32>
    %115 = vector.shape_cast %114 : vector<2x8xf32> to vector<2x8x1xf32>
    %116 = tpu.reciprocal %115 {approx = true} : vector<2x8x1xf32> -> vector<2x8x1xf32>
    %117 = vector.broadcast %116 : vector<2x8x1xf32> to vector<2x8x8xf32>
    %118 = arith.mulf %113, %117 : vector<2x8x8xf32>
    "tpu.trace_start"() <{level = 10 : i32, message = "bqk,bkd->bqd"}> : () -> ()
    %cst_39 = arith.constant dense<0.000000e+00> : vector<2x8x8xf32>
    %119 = tpu.matmul %118, %106, %cst_39 {dimension_numbers = #tpu.dot_dimension_numbers<[2], [1], [1], [2], [0, 0, 0, 1, 1, 2], [0], [0]>} : vector<2x8x8xf32>, vector<2x8x8xf32>, vector<2x8x8xf32> -> vector<2x8x8xf32>
    "tpu.trace_stop"() : () -> ()
    %120 = tpu.concatenate %62, %81, %100, %119 in 2 : vector<2x8x8xf32>, vector<2x8x8xf32>, vector<2x8x8xf32>, vector<2x8x8xf32> -> vector<2x8x32xf32>
    %121 = vector.shape_cast %120 : vector<2x8x32xf32> to vector<16x32xf32>
    %c0_40 = arith.constant 0 : index
    %c0_41 = arith.constant 0 : index
    %c0_42 = arith.constant 0 : index
    %122 = vector.load %arg6[%c0_40, %c0_41, %c0_42] : memref<1x32x32xf32, #tpu.memory_space<vmem>>, vector<1x32x32xf32>
    %123 = vector.shape_cast %122 : vector<1x32x32xf32> to vector<32x32xf32>
    %cst_43 = arith.constant dense<0.000000e+00> : vector<16x32xf32>
    %124 = tpu.matmul %121, %123, %cst_43 {dimension_numbers = #tpu.dot_dimension_numbers<[1], [0], [0], [1], [0, 0, 1, 1], [], []>} : vector<16x32xf32>, vector<32x32xf32>, vector<16x32xf32> -> vector<16x32xf32>
    %c0_44 = arith.constant 0 : index
    %c0_45 = arith.constant 0 : index
    %c0_46 = arith.constant 0 : index
    %125 = vector.load %arg7[%c0_44, %c0_45, %c0_46] : memref<1x1x32xf32, #tpu.memory_space<vmem>>, vector<1x1x32xf32>
    %126 = vector.shape_cast %125 : vector<1x1x32xf32> to vector<1x32xf32>
    %127 = vector.broadcast %126 : vector<1x32xf32> to vector<16x32xf32>
    %128 = arith.addf %124, %127 : vector<16x32xf32>
    %129 = arith.addf %3, %128 : vector<16x32xf32>
    %c0_47 = arith.constant 0 : index
    %c0_48 = arith.constant 0 : index
    %c0_49 = arith.constant 0 : index
    %130 = vector.load %arg10[%c0_47, %c0_48, %c0_49] : memref<1x1x32xf32, #tpu.memory_space<vmem>>, vector<1x1x32xf32>
    %131 = vector.shape_cast %130 : vector<1x1x32xf32> to vector<1x32xf32>
    %c0_50 = arith.constant 0 : index
    %c0_51 = arith.constant 0 : index
    %c0_52 = arith.constant 0 : index
    %132 = vector.load %arg11[%c0_50, %c0_51, %c0_52] : memref<1x1x32xf32, #tpu.memory_space<vmem>>, vector<1x1x32xf32>
    %133 = vector.shape_cast %132 : vector<1x1x32xf32> to vector<1x32xf32>
    %cst_53 = arith.constant dense<0.000000e+00> : vector<16xf32>
    %134 = vector.multi_reduction <add>, %129, %cst_53 [1] : vector<16x32xf32> to vector<16xf32>
    %135 = vector.shape_cast %134 : vector<16xf32> to vector<16x1xf32>
    %136 = arith.mulf %129, %129 : vector<16x32xf32>
    %cst_54 = arith.constant dense<0.000000e+00> : vector<16xf32>
    %137 = vector.multi_reduction <add>, %136, %cst_54 [1] : vector<16x32xf32> to vector<16xf32>
    %138 = vector.shape_cast %137 : vector<16xf32> to vector<16x1xf32>
    %cst_55 = arith.constant 3.125000e-02 : f32
    %139 = vector.broadcast %cst_55 : f32 to vector<16x1xf32>
    %140 = arith.mulf %135, %139 : vector<16x1xf32>
    %cst_56 = arith.constant 3.200000e+01 : f32
    %141 = vector.broadcast %cst_56 : f32 to vector<16x1xf32>
    %142 = arith.mulf %141, %140 : vector<16x1xf32>
    %143 = arith.mulf %142, %140 : vector<16x1xf32>
    %144 = arith.subf %138, %143 : vector<16x1xf32>
    %cst_57 = arith.constant 0.0322580636 : f32
    %145 = vector.broadcast %cst_57 : f32 to vector<16x1xf32>
    %146 = arith.mulf %144, %145 : vector<16x1xf32>
    %cst_58 = arith.constant 0.000000e+00 : f32
    %147 = vector.broadcast %cst_58 : f32 to vector<16x1xf32>
    %148 = arith.maximumf %146, %147 : vector<16x1xf32>
    %149 = math.sqrt %148 : vector<16x1xf32>
    %150 = vector.broadcast %140 : vector<16x1xf32> to vector<16x32xf32>
    %151 = arith.subf %129, %150 : vector<16x32xf32>
    %152 = vector.broadcast %131 : vector<1x32xf32> to vector<16x32xf32>
    %153 = arith.mulf %152, %151 : vector<16x32xf32>
    %cst_59 = arith.constant 9.99999997E-7 : f32
    %154 = vector.broadcast %cst_59 : f32 to vector<16x1xf32>
    %155 = arith.addf %149, %154 : vector<16x1xf32>
    %156 = vector.broadcast %155 : vector<16x1xf32> to vector<16x32xf32>
    %157 = arith.divf %153, %156 : vector<16x32xf32>
    %158 = vector.broadcast %133 : vector<1x32xf32> to vector<16x32xf32>
    %159 = arith.addf %157, %158 : vector<16x32xf32>
    %c0_60 = arith.constant 0 : index
    %c0_61 = arith.constant 0 : index
    %c0_62 = arith.constant 0 : index
    %160 = vector.load %arg12[%c0_60, %c0_61, %c0_62] : memref<1x32x64xf32, #tpu.memory_space<vmem>>, vector<1x32x64xf32>
    %161 = vector.shape_cast %160 : vector<1x32x64xf32> to vector<32x64xf32>
    %cst_63 = arith.constant dense<0.000000e+00> : vector<16x64xf32>
    %162 = tpu.matmul %159, %161, %cst_63 {dimension_numbers = #tpu.dot_dimension_numbers<[1], [0], [0], [1], [0, 0, 1, 1], [], []>} : vector<16x32xf32>, vector<32x64xf32>, vector<16x64xf32> -> vector<16x64xf32>
    %c0_64 = arith.constant 0 : index
    %c0_65 = arith.constant 0 : index
    %c0_66 = arith.constant 0 : index
    %163 = vector.load %arg13[%c0_64, %c0_65, %c0_66] : memref<1x1x64xf32, #tpu.memory_space<vmem>>, vector<1x1x64xf32>
    %164 = vector.shape_cast %163 : vector<1x1x64xf32> to vector<1x64xf32>
    %165 = vector.broadcast %164 : vector<1x64xf32> to vector<16x64xf32>
    %166 = arith.addf %162, %165 : vector<16x64xf32>
    %cst_67 = arith.constant 0.000000e+00 : f32
    %167 = vector.broadcast %cst_67 : f32 to vector<16x64xf32>
    %168 = arith.maximumf %166, %167 : vector<16x64xf32>
    %c0_68 = arith.constant 0 : index
    %c0_69 = arith.constant 0 : index
    %c0_70 = arith.constant 0 : index
    %169 = vector.load %arg14[%c0_68, %c0_69, %c0_70] : memref<1x64x32xf32, #tpu.memory_space<vmem>>, vector<1x64x32xf32>
    %170 = vector.shape_cast %169 : vector<1x64x32xf32> to vector<64x32xf32>
    %cst_71 = arith.constant dense<0.000000e+00> : vector<16x32xf32>
    %171 = tpu.matmul %168, %170, %cst_71 {dimension_numbers = #tpu.dot_dimension_numbers<[1], [0], [0], [1], [0, 0, 1, 1], [], []>} : vector<16x64xf32>, vector<64x32xf32>, vector<16x32xf32> -> vector<16x32xf32>
    %c0_72 = arith.constant 0 : index
    %c0_73 = arith.constant 0 : index
    %c0_74 = arith.constant 0 : index
    %172 = vector.load %arg15[%c0_72, %c0_73, %c0_74] : memref<1x1x32xf32, #tpu.memory_space<vmem>>, vector<1x1x32xf32>
    %173 = vector.shape_cast %172 : vector<1x1x32xf32> to vector<1x32xf32>
    %174 = vector.broadcast %173 : vector<1x32xf32> to vector<16x32xf32>
    %175 = arith.addf %171, %174 : vector<16x32xf32>
    %176 = arith.addf %129, %175 : vector<16x32xf32>
    %c0_75 = arith.constant 0 : index
    %c0_76 = arith.constant 0 : index
    %177 = vector.load %arg19[%c0_75, %c0_76] : memref<16x32xf32, #tpu.memory_space<vmem>>, vector<16x32xf32>
    tpu.vector_store %arg19[%c0_75, %c0_76], %176 {strides = array<i32>} : memref<16x32xf32, #tpu.memory_space<vmem>>, vector<16x32xf32>,
    %c1_i32 = arith.constant 1 : i32
    %178 = arith.cmpi eq, %arg1, %c1_i32 : i32
    %179 = arith.extui %178 : i1 to i32
    %c0_i32_77 = arith.constant 0 : i32
    %180 = arith.cmpi ne, %179, %c0_i32_77 : i32
    scf.if %180 {
      %c0_78 = arith.constant 0 : index
      %c0_79 = arith.constant 0 : index
      %181 = vector.load %arg16[%c0_78, %c0_79] : memref<1x32xf32, #tpu.memory_space<vmem>>, vector<1x32xf32>
      %c0_80 = arith.constant 0 : index
      %c0_81 = arith.constant 0 : index
      %182 = vector.load %arg17[%c0_80, %c0_81] : memref<1x32xf32, #tpu.memory_space<vmem>>, vector<1x32xf32>
      %cst_82 = arith.constant dense<0.000000e+00> : vector<16xf32>
      %183 = vector.multi_reduction <add>, %176, %cst_82 [1] : vector<16x32xf32> to vector<16xf32>
      %184 = vector.shape_cast %183 : vector<16xf32> to vector<16x1xf32>
      %185 = arith.mulf %176, %176 : vector<16x32xf32>
      %cst_83 = arith.constant dense<0.000000e+00> : vector<16xf32>
      %186 = vector.multi_reduction <add>, %185, %cst_83 [1] : vector<16x32xf32> to vector<16xf32>
      %187 = vector.shape_cast %186 : vector<16xf32> to vector<16x1xf32>
      %cst_84 = arith.constant 3.125000e-02 : f32
      %188 = vector.broadcast %cst_84 : f32 to vector<16x1xf32>
      %189 = arith.mulf %184, %188 : vector<16x1xf32>
      %cst_85 = arith.constant 3.200000e+01 : f32
      %190 = vector.broadcast %cst_85 : f32 to vector<16x1xf32>
      %191 = arith.mulf %190, %189 : vector<16x1xf32>
      %192 = arith.mulf %191, %189 : vector<16x1xf32>
      %193 = arith.subf %187, %192 : vector<16x1xf32>
      %cst_86 = arith.constant 0.0322580636 : f32
      %194 = vector.broadcast %cst_86 : f32 to vector<16x1xf32>
      %195 = arith.mulf %193, %194 : vector<16x1xf32>
      %cst_87 = arith.constant 0.000000e+00 : f32
      %196 = vector.broadcast %cst_87 : f32 to vector<16x1xf32>
      %197 = arith.maximumf %195, %196 : vector<16x1xf32>
      %198 = math.sqrt %197 : vector<16x1xf32>
      %199 = vector.broadcast %189 : vector<16x1xf32> to vector<16x32xf32>
      %200 = arith.subf %176, %199 : vector<16x32xf32>
      %201 = vector.broadcast %181 : vector<1x32xf32> to vector<16x32xf32>
      %202 = arith.mulf %201, %200 : vector<16x32xf32>
      %cst_88 = arith.constant 9.99999997E-7 : f32
      %203 = vector.broadcast %cst_88 : f32 to vector<16x1xf32>
      %204 = arith.addf %198, %203 : vector<16x1xf32>
      %205 = vector.broadcast %204 : vector<16x1xf32> to vector<16x32xf32>
      %206 = arith.divf %202, %205 : vector<16x32xf32>
      %207 = vector.broadcast %182 : vector<1x32xf32> to vector<16x32xf32>
      %208 = arith.addf %206, %207 : vector<16x32xf32>
      %209 = vector.shape_cast %208 : vector<16x32xf32> to vector<2x8x32xf32>
      %c0_89 = arith.constant 0 : index
      %c0_90 = arith.constant 0 : index
      %c0_91 = arith.constant 0 : index
      %210 = vector.load %arg18[%c0_89, %c0_90, %c0_91] : memref<2x8x32xf32, #tpu.memory_space<vmem>>, vector<2x8x32xf32>
      tpu.vector_store %arg18[%c0_89, %c0_90, %c0_91], %209 {strides = array<i32>} : memref<2x8x32xf32, #tpu.memory_space<vmem>>, vector<2x8x32xf32>,
    } else {
    }
    return
  }
  func.func @transform_0(%arg0: i32, %arg1: i32) -> (i32, i32, i32) {
    %c0_i32 = arith.constant 0 : i32
    %c0_i32_0 = arith.constant 0 : i32
    %c0_i32_1 = arith.constant 0 : i32
    return %arg0, %c0_i32, %c0_i32_0 : i32, i32, i32
  }
  func.func @transform_1(%arg0: i32, %arg1: i32) -> (i32, i32, i32) {
    %c0_i32 = arith.constant 0 : i32
    %c0_i32_0 = arith.constant 0 : i32
    %c0_i32_1 = arith.constant 0 : i32
    return %arg0, %c0_i32, %c0_i32_0 : i32, i32, i32
  }
  func.func @transform_2(%arg0: i32, %arg1: i32) -> (i32, i32, i32) {
    %c0_i32 = arith.constant 0 : i32
    %c0_i32_0 = arith.constant 0 : i32
    %c0_i32_1 = arith.constant 0 : i32
    return %arg1, %c0_i32, %c0_i32_0 : i32, i32, i32
  }
  func.func @transform_3(%arg0: i32, %arg1: i32) -> (i32, i32, i32) {
    %c0_i32 = arith.constant 0 : i32
    %c0_i32_0 = arith.constant 0 : i32
    %c0_i32_1 = arith.constant 0 : i32
    return %arg1, %c0_i32, %c0_i32_0 : i32, i32, i32
  }
  func.func @transform_4(%arg0: i32, %arg1: i32) -> (i32, i32, i32) {
    %c0_i32 = arith.constant 0 : i32
    %c0_i32_0 = arith.constant 0 : i32
    %c0_i32_1 = arith.constant 0 : i32
    return %arg1, %c0_i32, %c0_i32_0 : i32, i32, i32
  }
  func.func @transform_5(%arg0: i32, %arg1: i32) -> (i32, i32, i32) {
    %c0_i32 = arith.constant 0 : i32
    %c0_i32_0 = arith.constant 0 : i32
    %c0_i32_1 = arith.constant 0 : i32
    return %arg1, %c0_i32, %c0_i32_0 : i32, i32, i32
  }
  func.func @transform_6(%arg0: i32, %arg1: i32) -> (i32, i32, i32) {
    %c0_i32 = arith.constant 0 : i32
    %c0_i32_0 = arith.constant 0 : i32
    %c0_i32_1 = arith.constant 0 : i32
    return %arg1, %c0_i32, %c0_i32_0 : i32, i32, i32
  }
  func.func @transform_7(%arg0: i32, %arg1: i32) -> (i32, i32, i32) {
    %c0_i32 = arith.constant 0 : i32
    %c0_i32_0 = arith.constant 0 : i32
    %c0_i32_1 = arith.constant 0 : i32
    return %arg1, %c0_i32, %c0_i32_0 : i32, i32, i32
  }
  func.func @transform_8(%arg0: i32, %arg1: i32) -> (i32, i32, i32) {
    %c0_i32 = arith.constant 0 : i32
    %c0_i32_0 = arith.constant 0 : i32
    %c0_i32_1 = arith.constant 0 : i32
    return %arg1, %c0_i32, %c0_i32_0 : i32, i32, i32
  }
  func.func @transform_9(%arg0: i32, %arg1: i32) -> (i32, i32, i32) {
    %c0_i32 = arith.constant 0 : i32
    %c0_i32_0 = arith.constant 0 : i32
    %c0_i32_1 = arith.constant 0 : i32
    return %arg1, %c0_i32, %c0_i32_0 : i32, i32, i32
  }
  func.func @transform_10(%arg0: i32, %arg1: i32) -> (i32, i32, i32) {
    %c0_i32 = arith.constant 0 : i32
    %c0_i32_0 = arith.constant 0 : i32
    %c0_i32_1 = arith.constant 0 : i32
    return %arg1, %c0_i32, %c0_i32_0 : i32, i32, i32
  }
  func.func @transform_11(%arg0: i32, %arg1: i32) -> (i32, i32, i32) {
    %c0_i32 = arith.constant 0 : i32
    %c0_i32_0 = arith.constant 0 : i32
    %c0_i32_1 = arith.constant 0 : i32
    return %arg1, %c0_i32, %c0_i32_0 : i32, i32, i32
  }
  func.func @transform_12(%arg0: i32, %arg1: i32) -> (i32, i32, i32) {
    %c0_i32 = arith.constant 0 : i32
    %c0_i32_0 = arith.constant 0 : i32
    %c0_i32_1 = arith.constant 0 : i32
    return %arg1, %c0_i32, %c0_i32_0 : i32, i32, i32
  }
  func.func @transform_13(%arg0: i32, %arg1: i32) -> (i32, i32, i32) {
    %c0_i32 = arith.constant 0 : i32
    %c0_i32_0 = arith.constant 0 : i32
    %c0_i32_1 = arith.constant 0 : i32
    return %arg1, %c0_i32, %c0_i32_0 : i32, i32, i32
  }
  func.func @transform_14(%arg0: i32, %arg1: i32) -> (i32, i32) {
    %c0_i32 = arith.constant 0 : i32
    %c0_i32_0 = arith.constant 0 : i32
    %c0_i32_1 = arith.constant 0 : i32
    return %c0_i32, %c0_i32_0 : i32, i32
  }
  func.func @transform_15(%arg0: i32, %arg1: i32) -> (i32, i32) {
    %c0_i32 = arith.constant 0 : i32
    %c0_i32_0 = arith.constant 0 : i32
    %c0_i32_1 = arith.constant 0 : i32
    return %c0_i32, %c0_i32_0 : i32, i32
  }
  func.func @transform_16(%arg0: i32, %arg1: i32) -> (i32, i32, i32) {
    %c0_i32 = arith.constant 0 : i32
    %c0_i32_0 = arith.constant 0 : i32
    %c0_i32_1 = arith.constant 0 : i32
    return %arg0, %c0_i32, %c0_i32_0 : i32, i32, i32
  }
}

</mosaic_0001>

<bundles_post_ra>
// kernel: tpu_custom_call.1
= control target key start
LH: loop header
LB: loop body
LE: loop exit
PB: predicated region body
PF: predicated region fallthrough
CT: control target
= control target key end

     0   :  { %s3934_s0 = inlined_call_operand.hbm [shape: f32[2,8,32], index: 0, kind: input, shape index: {}]   ;;  %s3935_s1 = inlined_call_operand.vmem [shape: f32[2,1,8], index: 1, kind: input, shape index: {}]   ;;  %s3936_s2 = inlined_call_operand.vmem [shape: f32[2,32,96], index: 2, kind: input, shape index: {}]   ;;  %s3937_s3 = inlined_call_operand.vmem [shape: f32[2,1,96], index: 3, kind: input, shape index: {}]   ;;  %s3938_s4 = inlined_call_operand.vmem [shape: f32[2,32,32], index: 4, kind: input, shape index: {}]   ;;  %s3939_s5 = inlined_call_operand.vmem [shape: f32[2,1,32], index: 5, kind: input, shape index: {}]   ;;  %s3940_s6 = inlined_call_operand.vmem [shape: f32[2,1,32], index: 6, kind: input, shape index: {}]   ;;  %s3941_s7 = inlined_call_operand.vmem [shape: f32[2,1,32], index: 7, kind: input, shape index: {}]   ;;  %s3942_s8 = inlined_call_operand.vmem [shape: f32[2,1,32], index: 8, kind: input, shape index: {}]   ;;  %s3943_s9 = inlined_call_operand.vmem [shape: f32[2,1,32], index: 9, kind: input, shape index: {}]   ;;  %s3944_s10 = inlined_call_operand.vmem [shape: f32[2,32,64], index: 10, kind: input, shape index: {}]   ;;  %s3945_s11 = inlined_call_operand.vmem [shape: f32[2,1,64], index: 11, kind: input, shape index: {}]   ;;  %s3946_s12 = inlined_call_operand.vmem [shape: f32[2,64,32], index: 12, kind: input, shape index: {}]   ;;  %s3947_s13 = inlined_call_operand.vmem [shape: f32[2,1,32], index: 13, kind: input, shape index: {}]   ;;  %s3948_s14 = inlined_call_operand.vmem [shape: f32[1,32], index: 14, kind: input, shape index: {}]   ;;  %s3949_s15 = inlined_call_operand.vmem [shape: f32[1,32], index: 15, kind: input, shape index: {}]   ;;  %s3950_s16 = inlined_call_operand.hbm [shape: f32[2,8,32], index: 16, kind: output, shape index: {}]  }
   0x1   :  { %3962 = sst [smem:[#allocation13_spill]] %s3934_s0 }
   0x2   :  { %3963 = sst [smem:[#allocation14_spill]] %s3935_s1 }
   0x3   :  { %3964 = sst [smem:[#allocation15_spill]] %s3936_s2 }
   0x4   :  { %3965 = sst [smem:[#allocation16_spill]] %s3938_s4 }
   0x5   :  { %3966 = sst [smem:[#allocation17_spill]] %s3948_s14 }
   0x6   :  { %3967 = sst [smem:[#allocation18_spill]] %s3949_s15 }
   0x7   :  { %3968 = sst [smem:[#allocation19_spill]] %s3950_s16 }
   0x8   :  { %21 = vsyncpa [#allocation4], 0 }
   0x9   :  { %22 = vsyncpa [#allocation5], 0  ;;  %s3509_s21 = smov 0   ;;  %s3511_s22 = smov 0  }
   0xa   :  { %s3513_s23 = smov 0  }
   0xb LB: > { %3969 = sst [smem:[#allocation9_spill]] %s3397_s22  ;;  %s3952_s24 = sadd.s32 4294967295, %s3401_s23   ;;  %s3401_s23 = sphi %s3513_s23, %s28_s23   ;;  %s3397_s22 = sphi %s3511_s22, %s3994_s22   ;;  %s3393_s21 = sphi %s3509_s21, %s3993_s21  }
   0xc   : > { %3970 = sst [smem:[#allocation10_spill]] %s3401_s23  ;;  %s37_s25 = sadd.s32 1, %s3397_s22 }
   0xd   : > { %p38_p0 = scmp.ge.s32.totalorder %s37_s25, 2  ;;  %p2900_p1 = scmp.ge.s32.totalorder %s3401_s23, 1 }
   0xe   : > { %p477_p2 = scmp.lt.s32.totalorder %s3401_s23, 3  ;;  %p3536_p4 = scmp.eq.s32.totalorder %s3952_s24, 0 }
   0xf   : > { %s3996_s25 = smov (%p38_p0, %s37_s25), 0  ;;  %s3403_s28 = smov [#allocation3]  }
  0x10   : > { %3971 = sst [smem:[#allocation11_spill]] %s3996_s25  ;;  %p3530_p3 = pnand %p2900_p1, %p477_p2 }
  0x11   : > { %s3973_s27 = scalar_select %p3536_p4, 1, 0 }
  0x12   : > { %s3972_s26 = scalar_select %p3530_p3, 1, 0 }
  0x13   : > { %p3208_p5 = pneg %p3530_p3  ;;  %s492_s29 = sshll.u32 %s3403_s28, 4  ;;  %s493_s29 = int_to_ptr.vmem [resolvable:$true] %s492_s29 }
  0x14   : > { %s3975_s18 = sld [smem:[#allocation13_spill]] }
  0x15   : > { %p3544_p6 = pnand %p3536_p4, %p3208_p5 }
  0x17   : > { %p3319_p8 = pneg %p3544_p6 }
  0x1a   : > { %s3317_s19 = scalar_lea.hbm %s3975_s18, 256 }
  0x1b   : > { %p3318_p7 = scmp.ne.s32.totalorder %s3975_s18, %s3317_s19  ;;  %p3324_p11 = scmp.lt.u32.totalorder %s3317_s19, %s3975_s18 }
  0x1d   : > { %p3320_p9 = pnand %p3319_p8, %p3318_p7 }
  0x1f   : > { %p3321_p10 = pneg %p3320_p9 }
  0x21   : > { %p3326_p12 = pnand %p3324_p11, %p3321_p10 }
  0x23   : > { %3329 = shalt.err (!%p3326_p12)
}
  0x24   : > { %s3330_s22 = scalar_lea.vmem %s493_s29, 256  ;;  %p3338_p2 = scmp.lt.s32.totalorder %s493_s29, %s493_s29 }
  0x25   : > { %p3331_p13 = scmp.ne.s32.totalorder %s493_s29, %s3330_s22  ;;  %p3339_p5 = scmp.lt.s32.totalorder %s3330_s22, %s3330_s22 }
  0x27   : > { %p3333_p0 = pnand %p3331_p13, %p3319_p8  ;;  %p3340_p4 = por %p3339_p5, %p3338_p2 }
  0x29   : > { %p3334_p1 = pneg %p3333_p0 }
  0x2b   : > { %p3341_p3 = pnand %p3340_p4, %p3334_p1 }
  0x2d   : > { %3344 = shalt.err (!%p3341_p3)
}
  0x2e   : > { %s3404_s24 = smov 128   ;;  %s3405_s0 = smov 8  }
  0x2f   : > { %3211 = dma.hbm_to_vmem [thread:$0]  (!%p3544_p6), %s3975_s18, 256, %s493_s29, [#allocation4], %s3404_s24, %s3404_s24, %s3405_s0  }
  0x30   : > { %p3976_p7 = scmp.ne.s32.totalorder %s3972_s26, 0 }
  0x32   : > { %602 = sbr.rel (%p3976_p7) target bundleno = 4121 (0x1019), region = 84 }
  0x39   : > { %p3977_p9 = scmp.ne.s32.totalorder %s3973_s27, 0 }
  0x3b   : > { %3384 = dma.done.wait (%p3977_p9), [#allocation4], 256  }
  0x3c   : > { %3386 = vsyncadd (%p3977_p9), [#allocation4], 4294967040  ;;  %p696_p3 = scmp.lt.s32.totalorder %s3393_s21, 1  ;;  %s3978_s2 = sld [smem:[#allocation15_spill]] }
  0x3d   : > { %s3979_s4 = sld [smem:[#allocation16_spill]]  ;;  %p2914_p4 = scmp.ne.s32.totalorder %s3393_s21, 0 }
  0x3e   : > { %s3572_s22 = scalar_select %p696_p3, %s3393_s21, 1 }
  0x3f   : > { %744 = sbr.rel (%p2914_p4) target bundleno = 70 (0x46), region = 92  ;;  %v745_v0 = vld [vmem:[#allocation3] sm:$0xff] (!%p2914_p4)  ;;  %vm747_vm0 = vcmask (!%p2914_p4), 261120   ;;  %v746_v1 = vld [vmem:[#allocation3 + $0x8] sm:$0xff] (!%p2914_p4) }
  0x40   : > { %s2964_s25 = sshll.u32 %s3572_s22, 5  ;;  %s714_s14 = scalar_lea.vmem %s3940_s6, %s3572_s22  ;;  %748 = vst.msk [vmem:[#allocation2] sm:$0xff] (!%p2914_p4), %vm747_vm0, %v745_v0  ;;  %749 = vst.msk [vmem:[#allocation2 + $0x8] sm:$0xff] (!%p2914_p4), %vm747_vm0, %v746_v1 }
  0x41   : > { %s723_s0 = scalar_lea.vmem %s3943_s9, %s3572_s22  ;;  %s3612_s18 = scalar_lea.vmem %s3944_s10, %s2964_s25 }
  0x42   : > { %s3582_s28 = scalar_lea.vmem %s3978_s2, %s2964_s25  ;;  %s720_s2 = scalar_lea.vmem %s3942_s8, %s3572_s22 }
  0x43   : > { %s3587_s17 = scalar_lea.vmem %s3979_s4, %s2964_s25  ;;  %s731_s23 = scalar_lea.vmem %s3945_s11, %s3572_s22 }
  0x44   : > { %3980 = sst [smem:[#allocation12_spill]] %s3587_s17  ;;  %s2967_s16 = sshll.u32 %s3572_s22, 6 }
  0x45   : > { %s3622_s27 = scalar_lea.vmem %s3946_s12, %s2967_s16  ;;  %s739_s1 = scalar_lea.vmem %s3947_s13, %s3572_s22 }
  0x46 PF: > { %vm768_vm1 = vcmask 261120   ;;  %v833_v10 = vld [vmem:[%s3582_s28] sm:$0xff]  ;;  %v834_v11 = vld [vmem:[%s3582_s28 + $0x8] sm:$0xff]  ;;  %v835_v12 = vld [vmem:[%s3582_s28 + $0x10] sm:$0xff]  ;;  %s3981_s17 = scalar_lea.vmem %s3941_s7, %s3572_s22  ;;  %v3406_v56 = vmov 0.0   ;;  %vm3407_vm6 = vmmov 0   ;;  %s3982_s20 = scalar_lea.vmem %s3937_s3, %s3572_s22 }
  0x47   : > { %v3629_v2 = vld [vmem:[#allocation2] sm:$0xff]  ;;  %v3631_v3 = vld [vmem:[#allocation2 + $0x8] sm:$0xff]  ;;  %v3160_v13 = vpack.c.bf16 %v834_v11, %v833_v10  ;;  %v836_v14 = vld [vmem:[%s3582_s28 + $0x18] sm:$0xff]  ;;  %3049 = vmatprep.subr.mxu0 %v3406_v56  ;;  %3051 = vmatprep.mubr.msk.f32.mxu0 %vm3407_vm6, %v3406_v56  ;;  %s3408_s15 = smov 96   ;;  %vm928_vm7 = vcmask 64512   ;;  %s3983_s30 = sld [smem:[#allocation14_spill]] }
  0x48   : > { %v769_v4 = vsel %vm768_vm1, %v3629_v2, 0.0  ;;  %v775_v5 = vmul.f32 %v3629_v2, %v3629_v2  ;;  %v776_v6 = vmul.f32 %v3631_v3, %v3631_v3  ;;  %v772_v7 = vsel %vm768_vm1, %v3631_v3, 0.0  ;;  %v2917_v45 = vld [vmem:[%s714_s14] ss:$0 sm:$0xff]  ;;  %s3409_s16 = smov 64   ;;  %s3410_s25 = smov 88  }
  0x49   : > { %770 = vadd.xlane.f32.xlu0 %v769_v4  ;;  %v3164_v15 = vpack.c.bf16 %v836_v14, %v835_v12  ;;  %3161 = vmatprep.subr.bf16.mxu1 %v3160_v13  ;;  %v2918_v49 = vld [vmem:[%s3981_s17] ss:$0 sm:$0xff]  ;;  %s3411_s28 = smov 120   ;;  %s3412_s17 = smov 56   ;;  %vm2273_vm8 = vcmask 195584   ;;  %vm2270_vm9 = vcmask 130048  }
  0x4a   : > { %v777_v8 = vsel %vm768_vm1, %v775_v5, 0.0  ;;  %v780_v9 = vsel %vm768_vm1, %v776_v6, 0.0  ;;  %3163 = vmatpush3.bf16.msra.mxu1 %v3160_v13  ;;  %v2919_v57 = vld [vmem:[%s3982_s20] ss:$0 sm:$0xff]  ;;  %s3413_s14 = smov 80   ;;  %s3414_s24 = smov 112  }
  0x4b   : > { %778 = vadd.xlane.f32.xlu1 %v777_v8  ;;  %3165 = vmatprep.subr.bf16.mxu1 %v3164_v15  ;;  %s3415_s20 = smov 48   ;;  %s3417_s26 = smov 104   ;;  %vm2545_vm14 = vcmask 523264  }
  0x4c   : > { %s3418_s29 = smov 40   ;;  %s3419_s19 = smov 8  }
  0x4d   : > { %773 = vadd.xlane.f32.xlu0 %v772_v7  ;;  %v3693_v0 = vld [vmem:[%s3983_s30] ss:$0 sm:$0xff]  ;;  %v3699_v6 = vld [vmem:[%s3983_s30 + $0x1] ss:$0 sm:$0xff]  ;;  %s3420_s4 = smov 16   ;;  %p2957_p6 = scmp.ne.s32.totalorder %s3393_s21, 1 }
  0x4e   : > { %3167 = vmatpush3.bf16.msra.mxu1 %v3164_v15 }
  0x4f   : > { %781 = vadd.xlane.f32.xlu1 %v780_v9  ;;  %3039 = vmatprep.subr.mxu1 %v3406_v56 }
  0xd6   : > { %v771_v16 = vpop.xlane.xlu0 %770 }
  0xd7   : > { %v783_v17 = vmul.f32 0.03125, %v771_v16 }
  0xd8   : > { %v779_v18 = vpop.xlane.xlu1 %778 }
  0xd9   : > { %v785_v19 = vmul.f32 32.0, %v783_v17  ;;  %v809_v44 = vsub.f32 %v3629_v2, %v783_v17 }
  0xda   : > { %v774_v20 = vpop.xlane.xlu0 %773 }
  0xdb   : > { %v784_v21 = vmul.f32 0.03125, %v774_v20  ;;  %v787_v22 = vmul.f32 %v785_v19, %v783_v17  ;;  %v817_v47 = vmul.f32 %v2917_v45, %v809_v44 }
  0xdc   : > { %v782_v25 = vpop.xlane.xlu1 %781 }
  0xdd   : > { %v789_v23 = vsub.f32 %v779_v18, %v787_v22  ;;  %v786_v24 = vmul.f32 32.0, %v784_v21  ;;  %v810_v46 = vsub.f32 %v3631_v3, %v784_v21 }
  0xdf   : > { %v791_v26 = vmul.f32 0.032258064, %v789_v23  ;;  %v788_v27 = vmul.f32 %v786_v24, %v784_v21  ;;  %v818_v51 = vmul.f32 %v2917_v45, %v810_v46 }
  0xe1   : > { %v793_v28 = vmax.f32 %v791_v26, 0.0  ;;  %v790_v29 = vsub.f32 %v782_v25, %v788_v27 }
  0xe3   : > { %3261 = vrsqrt.f32 %v793_v28  ;;  %v792_v30 = vmul.f32 0.032258064, %v790_v29  ;;  %vm797_vm2 = vcmp.eq.f32.partialorder %v793_v28, inf  ;;  %v800_v34 = vand.u32 2147483648, %v793_v28 }
  0xe4   : > { %vm799_vm3 = vcmp.eq.f32.partialorder %v793_v28, 0.0 }
  0xe5   : > { %v794_v31 = vmax.f32 %v792_v30, 0.0 }
  0xe7   : > { %3263 = vrsqrt.f32 %v794_v31  ;;  %vm804_vm4 = vcmp.eq.f32.partialorder %v794_v31, inf  ;;  %v807_v40 = vand.u32 2147483648, %v794_v31  ;;  %vm806_vm5 = vcmp.eq.f32.partialorder %v794_v31, 0.0 }
  0xed   : > { %v3262_v32 = vpop.eup %3261 }
  0xee   : > { %v796_v33 = vmul.f32 %v3262_v32, %v793_v28 }
  0xf0   : > { %v798_v35 = vsel %vm797_vm2, %v793_v28, %v796_v33 }
  0xf1   : > { %v3264_v36 = vpop.eup %3263  ;;  %v801_v37 = vsel %vm799_vm3, %v800_v34, %v798_v35 }
  0xf2   : > { %v803_v38 = vmul.f32 %v3264_v36, %v794_v31  ;;  %v819_v39 = vadd.f32 1e-06, %v801_v37 }
  0xf4   : > { %v805_v41 = vsel %vm804_vm4, %v794_v31, %v803_v38  ;;  %3265 = vrcp.f32 %v819_v39 }
  0xf5   : > { %v808_v42 = vsel %vm806_vm5, %v807_v40, %v805_v41 }
  0xf6   : > { %v820_v43 = vadd.f32 1e-06, %v808_v42 }
  0xf8   : > { %3267 = vrcp.f32 %v820_v43 }
  0xfe   : > { %v3266_v48 = vpop.eup %3265 }
  0xff   : > { %v822_v50 = vmul.f32 %v3266_v48, %v817_v47 }
 0x101   : > { %v831_v52 = vadd.f32 %v2918_v49, %v822_v50 }
 0x102   : > { %v3268_v53 = vpop.eup %3267 }
 0x103   : > { %v824_v54 = vmul.f32 %v3268_v53, %v818_v51  ;;  %3036 = vmatprep.mubr.msk.f32.mxu1 %vm768_vm1, %v831_v52 }
 0x105   : > { %v832_v55 = vadd.f32 %v2918_v49, %v824_v54 }
 0x107   : > { %3037 = vmatmul.mubr.msk.f32.vlgmr.msra.gmra.mrb[0].mxu1 %vm768_vm1, %v832_v55 }
 0x108   : > { %3041 = vmatprep.mubr.msk.f32.mxu1 %vm3407_vm6, %v3406_v56 }
 0x1da   : > { %v3038_v58 = vpop.f32.mrb[0].mxu1 }
 0x1db   : > { %v3672_v59 = vadd.f32 %v3038_v58, %v2919_v57  ;;  %v916_v60 = vpop.f32.mrb[1].mxu1 }
 0x1dc   : > { %v3674_v61 = vadd.f32 %v2919_v57, %v916_v60 }
 0x1dd   : > { %1004 = vrot.lane.b32.xlu1 %v3672_v59, %s3408_s15 }
 0x1de   : > { %926 = vrot.lane.b32.xlu0 %v3674_v61, %s3408_s15  ;;  %s3416_s15 = smov 72  }
 0x24f   : > { %v1005_v63 = vpop.permute.xlu1 %1004 }
 0x250   : > { %v927_v62 = vpop.permute.xlu0 %926 }
 0x251   : > { %3040 = vmatpush3.xpose.msk.msra.mxu1 %vm928_vm7, %v927_v62 }
 0x252   : > { %3044 = vmatprep.subr.mxu1 %v3406_v56 }
 0x254   : > { %3042 = vmatmul.mubr.msk.f32.vlgmr.msra.gmra.mrb[2].mxu1 %vm928_vm7, %v3674_v61 }
 0x255   : > { %3045 = vmatpush3.xpose.msk.msra.mxu1 %vm928_vm7, %v1005_v63  ;;  %3046 = vmatprep.mubr.msk.f32.mxu1 %vm3407_vm6, %v3406_v56 }
 0x256   : > { %3054 = vmatprep.subr.mxu1 %v3406_v56 }
 0x258   : > { %3047 = vmatmul.mubr.msk.f32.vlgmr.msra.gmra.mrb[4].mxu1 %vm928_vm7, %v3672_v59 }
 0x259   : > { %3056 = vmatprep.mubr.msk.f32.mxu1 %vm3407_vm6, %v3406_v56 }
 0x327   : > { %v999_v1 = vpop.f32.mrb[2].mxu1 }
 0x328   : > { %v1000_v4 = vadd.f32 %v3693_v0, %v999_v1  ;;  %v3043_v5 = vpop.f32.mrb[3].mxu1 }
 0x32a   : > { %v1080_v7 = vsel %vm928_vm7, %v1000_v4, -inf }
 0x32b   : > { %1081 = vmax.xlane.f32.xlu1 %v1080_v7  ;;  %v1076_v8 = vpop.f32.mrb[4].mxu1 }
 0x32c   : > { %v1077_v9 = vadd.f32 %v3699_v6, %v1076_v8  ;;  %v3048_v10 = vpop.f32.mrb[5].mxu1 }
 0x32e   : > { %v1083_v11 = vsel %vm928_vm7, %v1077_v9, -inf }
 0x32f   : > { %1084 = vmax.xlane.f32.xlu0 %v1083_v11 }
 0x33c   : > { %1178 = vrot.lane.b32.xlu1 %v3672_v59, %s3409_s16 }
 0x340   : > { %1256 = vrot.lane.b32.xlu1 %v3674_v61, %s3410_s25 }
 0x344   : > { %1334 = vrot.lane.b32.xlu1 %v3672_v59, %s3410_s25  ;;  %s3421_s25 = smov 24  }
 0x345   : > { %1102 = vrot.lane.b32.xlu0 %v3674_v61, %s3409_s16  ;;  %s3984_s16 = sld [smem:[#allocation12_spill]] }
 0x3b8   : > { %v1082_v12 = vpop.xlane.xlu1 %1081 }
 0x3b9   : > { %v1086_v13 = vsub.f32 %v1000_v4, %v1082_v12 }
 0x3bb   : > { %v1088_v14 = vmul.f32 1.442695, %v1086_v13 }
 0x3bc   : > { %v1179_v15 = vpop.permute.xlu1 %1178  ;;  %v1085_v16 = vpop.xlane.xlu0 %1084 }
 0x3bd   : > { %3269 = vpow2.f32 %v1088_v14  ;;  %v1087_v17 = vsub.f32 %v1077_v9, %v1085_v16  ;;  %3055 = vmatpush3.msra.mxu1 %v1179_v15 }
 0x3be   : > { %3064 = vmatprep.subr.mxu1 %v3406_v56 }
 0x3bf   : > { %v1090_v18 = vmul.f32 1.442695, %v1087_v17 }
 0x3c0   : > { %v1103_v19 = vpop.permute.xlu0 %1102  ;;  %v1257_v24 = vpop.permute.xlu1 %1256 }
 0x3c1   : > { %3271 = vpow2.f32 %v1090_v18  ;;  %3050 = vmatpush3.msra.mxu0 %v1103_v19 }
 0x3c2   : > { %3059 = vmatprep.subr.mxu0 %v3406_v56 }
 0x3c4   : > { %v1335_v25 = vpop.permute.xlu1 %1334 }
 0x3c7   : > { %v3270_v20 = vpop.eup %3269 }
 0x3c8   : > { %v1092_v21 = vsel %vm928_vm7, %v3270_v20, 0.0 }
 0x3c9   : > { %1093 = vadd.xlane.f32.xlu0 %v1092_v21 }
 0x3cb   : > { %v3272_v22 = vpop.eup %3271 }
 0x3cc   : > { %v1095_v23 = vsel %vm928_vm7, %v3272_v22, 0.0 }
 0x3cd   : > { %1096 = vadd.xlane.f32.xlu1 %v1095_v23 }
 0x3de   : > { %1332 = vrot.lane.b32.xlu1 %v3672_v59, %s3411_s28 }
 0x3df   : > { %1254 = vrot.lane.b32.xlu0 %v3674_v61, %s3411_s28 }
 0x456   : > { %v1094_v26 = vpop.xlane.xlu0 %1093 }
 0x457   : > { %3273 = vrcp.f32 %v1094_v26 }
 0x45a   : > { %v1097_v27 = vpop.xlane.xlu1 %1096  ;;  %v1255_v32 = vpop.permute.xlu0 %1254 }
 0x45b   : > { %3275 = vrcp.f32 %v1097_v27 }
 0x45e   : > { %v1333_v33 = vpop.permute.xlu1 %1332 }
 0x461   : > { %v3274_v28 = vpop.eup %3273 }
 0x462   : > { %v1100_v29 = vmul.f32 %v3274_v28, %v3270_v20 }
 0x464   : > { %3052 = vmatmul.mubr.msk.f32.vlgmr.msra.gmra.mrb[0].mxu0 %vm928_vm7, %v1100_v29 }
 0x465   : > { %v3276_v30 = vpop.eup %3275  ;;  %3060 = vmatpush3.xpose.msk.msra.mxu0 %vm928_vm7, %v1257_v24  ;;  %3061 = vmatprep.mubr.msk.f32.mxu0 %vm3407_vm6, %v3406_v56 }
 0x466   : > { %v1101_v31 = vmul.f32 %v3276_v30, %v3272_v22  ;;  %3069 = vmatprep.subr.mxu0 %v3406_v56 }
 0x468   : > { %3057 = vmatmul.mubr.msk.f32.vlgmr.msra.gmra.mrb[6].mxu1 %vm928_vm7, %v1101_v31  ;;  %3062 = vmatmul.mubr.msk.f32.vlgmr.msra.gmra.mrb[2].mxu0 %vm928_vm7, %v1255_v32 }
 0x469   : > { %3065 = vmatpush3.xpose.msk.msra.mxu1 %vm928_vm7, %v1335_v25  ;;  %3066 = vmatprep.mubr.msk.f32.mxu1 %vm3407_vm6, %v3406_v56 }
 0x46a   : > { %3074 = vmatprep.subr.mxu1 %v3406_v56  ;;  %3071 = vmatprep.mubr.msk.f32.mxu0 %vm3407_vm6, %v3406_v56 }
 0x46c   : > { %3067 = vmatmul.mubr.msk.f32.vlgmr.msra.gmra.mrb[8].mxu1 %vm928_vm7, %v1333_v33 }
 0x46d   : > { %3076 = vmatprep.mubr.msk.f32.mxu1 %vm3407_vm6, %v3406_v56 }
 0x537   : > { %v3730_v34 = vpop.f32.mrb[0].mxu0 }
 0x538   : > { %v3053_v35 = vpop.f32.mrb[1].mxu0 }
 0x53b   : > { %v3732_v36 = vpop.f32.mrb[6].mxu1  ;;  %v1328_v37 = vpop.f32.mrb[2].mxu0 }
 0x53c   : > { %v1329_v38 = vadd.f32 %v3693_v0, %v1328_v37  ;;  %v3058_v39 = vpop.f32.mrb[7].mxu1  ;;  %v3063_v40 = vpop.f32.mrb[3].mxu0 }
 0x53e   : > { %v1410_v41 = vsel %vm928_vm7, %v1329_v38, -inf }
 0x53f   : > { %1411 = vmax.xlane.f32.xlu0 %v1410_v41  ;;  %v1406_v42 = vpop.f32.mrb[8].mxu1 }
 0x540   : > { %v1407_v43 = vadd.f32 %v3699_v6, %v1406_v42  ;;  %v3068_v44 = vpop.f32.mrb[9].mxu1 }
 0x542   : > { %v1413_v45 = vsel %vm928_vm7, %v1407_v43, -inf }
 0x543   : > { %1414 = vmax.xlane.f32.xlu1 %v1413_v45 }
 0x554   : > { %1508 = vrot.lane.b32.xlu1 %v3672_v59, %s3412_s17 }
 0x555   : > { %1432 = vrot.lane.b32.xlu0 %v3674_v61, %s3412_s17 }
 0x558   : > { %1586 = vrot.lane.b32.xlu1 %v3674_v61, %s3413_s14 }
 0x55c   : > { %1664 = vrot.lane.b32.xlu1 %v3672_v59, %s3413_s14  ;;  %s3985_s14 = scalar_lea.vmem %s3939_s5, %s3572_s22 }
 0x560   : > { %1662 = vrot.lane.b32.xlu1 %v3672_v59, %s3414_s24 }
 0x5cc   : > { %v1412_v46 = vpop.xlane.xlu0 %1411 }
 0x5cd   : > { %v1416_v47 = vsub.f32 %v1329_v38, %v1412_v46 }
 0x5cf   : > { %v1418_v48 = vmul.f32 1.442695, %v1416_v47 }
 0x5d0   : > { %v1433_v49 = vpop.permute.xlu0 %1432  ;;  %v1415_v50 = vpop.xlane.xlu1 %1414 }
 0x5d1   : > { %3277 = vpow2.f32 %v1418_v48  ;;  %v1417_v51 = vsub.f32 %v1407_v43, %v1415_v50  ;;  %3070 = vmatpush3.msra.mxu0 %v1433_v49 }
 0x5d2   : > { %3079 = vmatprep.subr.mxu0 %v3406_v56 }
 0x5d3   : > { %v1420_v52 = vmul.f32 1.442695, %v1417_v51 }
 0x5d4   : > { %v1509_v53 = vpop.permute.xlu1 %1508 }
 0x5d5   : > { %3279 = vpow2.f32 %v1420_v52  ;;  %3075 = vmatpush3.msra.mxu1 %v1509_v53 }
 0x5d6   : > { %3084 = vmatprep.subr.mxu1 %v3406_v56 }
 0x5d8   : > { %v1587_v63 = vpop.permute.xlu1 %1586 }
 0x5db   : > { %v3278_v54 = vpop.eup %3277 }
 0x5dc   : > { %v1422_v55 = vsel %vm928_vm7, %v3278_v54, 0.0  ;;  %v1665_v7 = vpop.permute.xlu1 %1664 }
 0x5dd   : > { %1423 = vadd.xlane.f32.xlu0 %v1422_v55 }
 0x5df   : > { %v3280_v57 = vpop.eup %3279 }
 0x5e0   : > { %v1425_v58 = vsel %vm928_vm7, %v3280_v57, 0.0  ;;  %v1663_v10 = vpop.permute.xlu1 %1662 }
 0x5e1   : > { %1426 = vadd.xlane.f32.xlu0 %v1425_v58 }
 0x5f7   : > { %1584 = vrot.lane.b32.xlu0 %v3674_v61, %s3414_s24 }
 0x66a   : > { %v1424_v60 = vpop.xlane.xlu0 %1423 }
 0x66b   : > { %3281 = vrcp.f32 %v1424_v60 }
 0x66e   : > { %v1427_v62 = vpop.xlane.xlu0 %1426 }
 0x66f   : > { %3283 = vrcp.f32 %v1427_v62 }
 0x672   : > { %v1585_v9 = vpop.permute.xlu0 %1584 }
 0x675   : > { %v3282_v1 = vpop.eup %3281 }
 0x676   : > { %v1430_v4 = vmul.f32 %v3282_v1, %v3278_v54 }
 0x678   : > { %3072 = vmatmul.mubr.msk.f32.vlgmr.msra.gmra.mrb[4].mxu0 %vm928_vm7, %v1430_v4 }
 0x679   : > { %v3284_v5 = vpop.eup %3283  ;;  %3080 = vmatpush3.xpose.msk.msra.mxu0 %vm928_vm7, %v1587_v63  ;;  %3081 = vmatprep.mubr.msk.f32.mxu0 %vm3407_vm6, %v3406_v56 }
 0x67a   : > { %v1431_v8 = vmul.f32 %v3284_v5, %v3280_v57  ;;  %3089 = vmatprep.subr.mxu0 %v3406_v56 }
 0x67c   : > { %3077 = vmatmul.mubr.msk.f32.vlgmr.msra.gmra.mrb[10].mxu1 %vm928_vm7, %v1431_v8  ;;  %3082 = vmatmul.mubr.msk.f32.vlgmr.msra.gmra.mrb[6].mxu0 %vm928_vm7, %v1585_v9 }
 0x67d   : > { %3085 = vmatpush3.xpose.msk.msra.mxu1 %vm928_vm7, %v1665_v7  ;;  %3086 = vmatprep.mubr.msk.f32.mxu1 %vm3407_vm6, %v3406_v56 }
 0x67e   : > { %3094 = vmatprep.subr.mxu1 %v3406_v56  ;;  %3091 = vmatprep.mubr.msk.f32.mxu0 %vm3407_vm6, %v3406_v56 }
 0x680   : > { %3087 = vmatmul.mubr.msk.f32.vlgmr.msra.gmra.mrb[12].mxu1 %vm928_vm7, %v1663_v10 }
 0x681   : > { %3096 = vmatprep.mubr.msk.f32.mxu1 %vm3407_vm6, %v3406_v56 }
 0x74b   : > { %v3764_v11 = vpop.f32.mrb[4].mxu0 }
 0x74c   : > { %v3073_v12 = vpop.f32.mrb[5].mxu0 }
 0x74f   : > { %v3766_v13 = vpop.f32.mrb[10].mxu1  ;;  %v1658_v14 = vpop.f32.mrb[6].mxu0 }
 0x750   : > { %v1659_v15 = vadd.f32 %v3693_v0, %v1658_v14  ;;  %v3078_v16 = vpop.f32.mrb[11].mxu1  ;;  %v3083_v17 = vpop.f32.mrb[7].mxu0 }
 0x751   : > { %v2276_v16 = vld [vmem:[%s3984_s16] sm:$0xff]  ;;  %v2277_v17 = vld [vmem:[%s3984_s16 + $0x8] sm:$0xff] }
 0x752   : > { %v1740_v18 = vsel %vm928_vm7, %v1659_v15, -inf }
 0x753   : > { %1741 = vmax.xlane.f32.xlu0 %v1740_v18  ;;  %v1736_v19 = vpop.f32.mrb[12].mxu1  ;;  %v2278_v18 = vld [vmem:[%s3984_s16 + $0x10] sm:$0xff] }
 0x754   : > { %v1737_v20 = vadd.f32 %v3699_v6, %v1736_v19  ;;  %v3088_v21 = vpop.f32.mrb[13].mxu1  ;;  %v2279_v19 = vld [vmem:[%s3984_s16 + $0x18] sm:$0xff] }
 0x756   : > { %v1743_v22 = vsel %vm928_vm7, %v1737_v20, -inf }
 0x757   : > { %1744 = vmax.xlane.f32.xlu1 %v1743_v22 }
 0x768   : > { %1838 = vrot.lane.b32.xlu1 %v3672_v59, %s3415_s20 }
 0x769   : > { %1762 = vrot.lane.b32.xlu0 %v3674_v61, %s3415_s20 }
 0x76c   : > { %1916 = vrot.lane.b32.xlu1 %v3674_v61, %s3416_s15 }
 0x770   : > { %1994 = vrot.lane.b32.xlu1 %v3672_v59, %s3416_s15 }
 0x774   : > { %1992 = vrot.lane.b32.xlu1 %v3672_v59, %s3417_s26 }
 0x7e0   : > { %v1742_v23 = vpop.xlane.xlu0 %1741 }
 0x7e1   : > { %v1746_v24 = vsub.f32 %v1659_v15, %v1742_v23 }
 0x7e3   : > { %v1748_v25 = vmul.f32 1.442695, %v1746_v24 }
 0x7e4   : > { %v1763_v26 = vpop.permute.xlu0 %1762  ;;  %v1745_v27 = vpop.xlane.xlu1 %1744 }
 0x7e5   : > { %3285 = vpow2.f32 %v1748_v25  ;;  %v1747_v28 = vsub.f32 %v1737_v20, %v1745_v27  ;;  %3090 = vmatpush3.msra.mxu0 %v1763_v26  ;;  %v3172_v20 = vpack.c.bf16 %v2279_v19, %v2278_v18 }
 0x7e6   : > { %3099 = vmatprep.subr.mxu0 %v3406_v56 }
 0x7e7   : > { %v1750_v29 = vmul.f32 1.442695, %v1747_v28 }
 0x7e8   : > { %v1839_v30 = vpop.permute.xlu1 %1838 }
 0x7e9   : > { %3287 = vpow2.f32 %v1750_v29  ;;  %3095 = vmatpush3.msra.mxu1 %v1839_v30 }
 0x7ea   : > { %3104 = vmatprep.subr.mxu1 %v3406_v56 }
 0x7ec   : > { %v1917_v39 = vpop.permute.xlu1 %1916 }
 0x7ef   : > { %v3286_v31 = vpop.eup %3285 }
 0x7f0   : > { %v1752_v32 = vsel %vm928_vm7, %v3286_v31, 0.0  ;;  %v1995_v43 = vpop.permute.xlu1 %1994 }
 0x7f1   : > { %1753 = vadd.xlane.f32.xlu0 %v1752_v32 }
 0x7f3   : > { %v3288_v33 = vpop.eup %3287 }
 0x7f4   : > { %v1755_v35 = vsel %vm928_vm7, %v3288_v33, 0.0  ;;  %v1993_v46 = vpop.permute.xlu1 %1992 }
 0x7f5   : > { %1756 = vadd.xlane.f32.xlu0 %v1755_v35 }
 0x80b   : > { %1914 = vrot.lane.b32.xlu0 %v3674_v61, %s3417_s26 }
 0x87e   : > { %v1754_v37 = vpop.xlane.xlu0 %1753 }
 0x87f   : > { %3289 = vrcp.f32 %v1754_v37 }
 0x882   : > { %v1757_v38 = vpop.xlane.xlu0 %1756 }
 0x883   : > { %3291 = vrcp.f32 %v1757_v38 }
 0x886   : > { %v1915_v45 = vpop.permute.xlu0 %1914 }
 0x889   : > { %v3290_v40 = vpop.eup %3289 }
 0x88a   : > { %v1760_v41 = vmul.f32 %v3290_v40, %v3286_v31 }
 0x88c   : > { %3092 = vmatmul.mubr.msk.f32.vlgmr.msra.gmra.mrb[8].mxu0 %vm928_vm7, %v1760_v41 }
 0x88d   : > { %v3292_v42 = vpop.eup %3291  ;;  %3100 = vmatpush3.xpose.msk.msra.mxu0 %vm928_vm7, %v1917_v39  ;;  %3101 = vmatprep.mubr.msk.f32.mxu0 %vm3407_vm6, %v3406_v56 }
 0x88e   : > { %v1761_v44 = vmul.f32 %v3292_v42, %v3288_v33  ;;  %3109 = vmatprep.subr.mxu0 %v3406_v56 }
 0x890   : > { %3097 = vmatmul.mubr.msk.f32.vlgmr.msra.gmra.mrb[14].mxu1 %vm928_vm7, %v1761_v44  ;;  %3102 = vmatmul.mubr.msk.f32.vlgmr.msra.gmra.mrb[10].mxu0 %vm928_vm7, %v1915_v45 }
 0x891   : > { %3105 = vmatpush3.xpose.msk.msra.mxu1 %vm928_vm7, %v1995_v43  ;;  %3106 = vmatprep.mubr.msk.f32.mxu1 %vm3407_vm6, %v3406_v56 }
 0x892   : > { %3114 = vmatprep.subr.mxu1 %v3406_v56  ;;  %3111 = vmatprep.mubr.msk.f32.mxu0 %vm3407_vm6, %v3406_v56 }
 0x894   : > { %3107 = vmatmul.mubr.msk.f32.vlgmr.msra.gmra.mrb[16].mxu1 %vm928_vm7, %v1993_v46 }
 0x895   : > { %3116 = vmatprep.mubr.msk.f32.mxu1 %vm3407_vm6, %v3406_v56 }
 0x95f   : > { %v1834_v47 = vpop.f32.mrb[8].mxu0 }
 0x960   : > { %v3093_v48 = vpop.f32.mrb[9].mxu0 }
 0x961   : > { %v2436_v48 = vld [vmem:[%s3612_s18] sm:$0xff] }
 0x963   : > { %v1910_v49 = vpop.f32.mrb[14].mxu1  ;;  %v1988_v50 = vpop.f32.mrb[10].mxu0 }
 0x964   : > { %v1989_v51 = vadd.f32 %v3693_v0, %v1988_v50  ;;  %v3098_v52 = vpop.f32.mrb[15].mxu1  ;;  %v3103_v53 = vpop.f32.mrb[11].mxu0  ;;  %v2438_v50 = vld [vmem:[%s3612_s18 + $0x10] sm:$0xff] }
 0x965   : > { %v2439_v52 = vld [vmem:[%s3612_s18 + $0x18] sm:$0xff] }
 0x966   : > { %v2070_v54 = vsel %vm928_vm7, %v1989_v51, -inf  ;;  %v3180_v53 = vpack.c.bf16 %v2439_v52, %v2438_v50 }
 0x967   : > { %2071 = vmax.xlane.f32.xlu0 %v2070_v54  ;;  %v2066_v55 = vpop.f32.mrb[16].mxu1  ;;  %v2530_v54 = vld [vmem:[%s3622_s27] sm:$0xff] }
 0x968   : > { %v2067_v57 = vadd.f32 %v3699_v6, %v2066_v55  ;;  %v3108_v58 = vpop.f32.mrb[17].mxu1  ;;  %v2531_v55 = vld [vmem:[%s3622_s27 + $0x8] sm:$0xff] }
 0x969   : > { %v3184_v58 = vpack.c.bf16 %v2531_v55, %v2530_v54 }
 0x96a   : > { %v2073_v60 = vsel %vm928_vm7, %v2067_v57, -inf }
 0x96b   : > { %2074 = vmax.xlane.f32.xlu1 %v2073_v60  ;;  %v2533_v60 = vld [vmem:[%s3622_s27 + $0x18] sm:$0xff] }
 0x97c   : > { %2168 = vrot.lane.b32.xlu1 %v3672_v59, %s3418_s29 }
 0x980   : > { %2246 = vrot.lane.b32.xlu1 %v3764_v11, %s3419_s19 }
 0x984   : > { %2248 = vrot.lane.b32.xlu1 %v3766_v13, %s3419_s19 }
 0x988   : > { %2256 = vrot.lane.b32.xlu1 %v1910_v49, %s3420_s4  ;;  %v2437_v49 = vld [vmem:[%s3612_s18 + $0x8] sm:$0xff] }
 0x9f4   : > { %v2072_v56 = vpop.xlane.xlu0 %2071 }
 0x9f5   : > { %v2076_v0 = vsub.f32 %v1989_v51, %v2072_v56  ;;  %v3176_v51 = vpack.c.bf16 %v2437_v49, %v2436_v48 }
 0x9f7   : > { %v2078_v62 = vmul.f32 1.442695, %v2076_v0  ;;  %v2534_v0 = vld [vmem:[%s3622_s27 + $0x20] sm:$0xff] }
 0x9f8   : > { %v2075_v6 = vpop.xlane.xlu1 %2074 }
 0x9f9   : > { %3293 = vpow2.f32 %v2078_v62  ;;  %v2077_v63 = vsub.f32 %v2067_v57, %v2075_v6  ;;  %v2532_v57 = vld [vmem:[%s3622_s27 + $0x10] sm:$0xff]  ;;  %v2535_v62 = vld [vmem:[%s3622_s27 + $0x28] sm:$0xff] }
 0x9fa   : > { %v3188_v56 = vpack.c.bf16 %v2533_v60, %v2532_v57  ;;  %v3192_v6 = vpack.c.bf16 %v2535_v62, %v2534_v0 }
 0x9fb   : > { %v2080_v1 = vmul.f32 1.442695, %v2077_v63 }
 0x9fc   : > { %v2169_v4 = vpop.permute.xlu1 %2168 }
 0x9fd   : > { %3295 = vpow2.f32 %v2080_v1  ;;  %3115 = vmatpush3.msra.mxu1 %v2169_v4 }
 0x9fe   : > { %3177 = vmatprep.subr.bf16.mxu1 %v3176_v51 }
 0xa00   : > { %v2247_v25 = vpop.permute.xlu1 %2246 }
 0xa01   : > { %v2268_v28 = vsel %vm928_vm7, %v3730_v34, %v2247_v25  ;;  %v2946_v34 = vld [vmem:[%s3985_s14] ss:$0 sm:$0xff] }
 0xa03   : > { %v3294_v59 = vpop.eup %3293 }
 0xa04   : > { %v2082_v5 = vsel %vm928_vm7, %v3294_v59, 0.0  ;;  %v2249_v26 = vpop.permute.xlu1 %2248 }
 0xa05   : > { %2083 = vadd.xlane.f32.xlu0 %v2082_v5  ;;  %v2269_v33 = vsel %vm928_vm7, %v3732_v36, %v2249_v26 }
 0xa07   : > { %v3296_v7 = vpop.eup %3295 }
 0xa08   : > { %v2085_v8 = vsel %vm928_vm7, %v3296_v7, 0.0  ;;  %v2257_v29 = vpop.permute.xlu1 %2256 }
 0xa09   : > { %2086 = vadd.xlane.f32.xlu0 %v2085_v8  ;;  %v2272_v35 = vsel %vm2270_vm9, %v2269_v33, %v2257_v29 }
 0xa1f   : > { %2092 = vrot.lane.b32.xlu0 %v3674_v61, %s3418_s29  ;;  %v3168_v61 = vpack.c.bf16 %v2277_v17, %v2276_v16 }
 0xa23   : > { %2254 = vrot.lane.b32.xlu0 %v1834_v47, %s3420_s4  ;;  %s3987_s4 = sld [smem:[#allocation18_spill]] (!%p2957_p6) }
 0xa92   : > { %v2084_v9 = vpop.xlane.xlu0 %2083 }
 0xa93   : > { %3297 = vrcp.f32 %v2084_v9 }
 0xa96   : > { %v2087_v10 = vpop.xlane.xlu0 %2086 }
 0xa97   : > { %3299 = vrcp.f32 %v2087_v10 }
 0xa9a   : > { %v2093_v11 = vpop.permute.xlu0 %2092 }
 0xa9b   : > { %3110 = vmatpush3.msra.mxu0 %v2093_v11 }
 0xa9c   : > { %3169 = vmatprep.subr.bf16.mxu0 %v3168_v61 }
 0xa9d   : > { %v3298_v12 = vpop.eup %3297 }
 0xa9e   : > { %v2090_v13 = vmul.f32 %v3298_v12, %v3294_v59  ;;  %v2255_v27 = vpop.permute.xlu0 %2254 }
 0xa9f   : > { %v2271_v30 = vsel %vm2270_vm9, %v2268_v28, %v2255_v27 }
 0xaa0   : > { %3112 = vmatmul.mubr.msk.f32.vlgmr.msra.gmra.mrb[12].mxu0 %vm928_vm7, %v2090_v13 }
 0xaa1   : > { %v3300_v14 = vpop.eup %3299  ;;  %3171 = vmatpush3.bf16.msra.mxu0 %v3168_v61 }
 0xaa2   : > { %v2091_v15 = vmul.f32 %v3300_v14, %v3296_v7  ;;  %3173 = vmatprep.subr.bf16.mxu0 %v3172_v20 }
 0xaa4   : > { %3117 = vmatmul.mubr.msk.f32.vlgmr.msra.gmra.mrb[18].mxu1 %vm928_vm7, %v2091_v15 }
 0xaa5   : > { %3175 = vmatpush3.bf16.msra.mxu0 %v3172_v20  ;;  %3179 = vmatpush3.bf16.msra.mxu1 %v3176_v51  ;;  %v2954_v51 = vld [vmem:[%s739_s1] ss:$0 sm:$0xff] }
 0xaa6   : > { %3181 = vmatprep.subr.bf16.mxu1 %v3180_v53  ;;  %3185 = vmatprep.subr.bf16.mxu0 %v3184_v58 }
 0xaa9   : > { %3183 = vmatpush3.bf16.msra.mxu1 %v3180_v53 }
 0xb73   : > { %v2164_v21 = vpop.f32.mrb[12].mxu0 }
 0xb74   : > { %2262 = vrot.lane.b32.xlu0 %v2164_v21, %s3421_s25  ;;  %v3113_v22 = vpop.f32.mrb[13].mxu0 }
 0xb77   : > { %v2240_v23 = vpop.f32.mrb[18].mxu1 }
 0xb78   : > { %2264 = vrot.lane.b32.xlu1 %v2240_v23, %s3421_s25  ;;  %v3118_v24 = vpop.f32.mrb[19].mxu1 }
 0xbe6   : > { %v2263_v31 = vpop.permute.xlu0 %2262 }
 0xbe7   : > { %v2274_v32 = vsel %vm2273_vm8, %v2271_v30, %v2263_v31  ;;  %v2949_v30 = vld [vmem:[%s720_s2] ss:$0 sm:$0xff] }
 0xbe8   : > { %3127 = vmatprep.mubr.msk.f32.mxu0 %vm768_vm1, %v2274_v32 }
 0xbea   : > { %v2265_v37 = vpop.permute.xlu1 %2264 }
 0xbeb   : > { %v2275_v38 = vsel %vm2273_vm8, %v2272_v35, %v2265_v37  ;;  %v2950_v35 = vld [vmem:[%s723_s0] ss:$0 sm:$0xff] }
 0xbec   : > { %3128 = vmatmul.mubr.msk.f32.vlgmr.msra.gmra.mrb[14].mxu0 %vm768_vm1, %v2275_v38 }
 0xbed   : > { %3187 = vmatpush3.bf16.msra.mxu0 %v3184_v58 }
 0xbee   : > { %3189 = vmatprep.subr.bf16.mxu0 %v3188_v56 }
 0xbf1   : > { %3191 = vmatpush3.bf16.msra.mxu0 %v3188_v56 }
 0xbf2   : > { %3193 = vmatprep.subr.bf16.mxu0 %v3192_v6 }
 0xbf5   : > { %3195 = vmatpush3.bf16.msra.mxu0 %v3192_v6 }
 0xcbf   : > { %v3129_v39 = vpop.f32.mrb[14].mxu0 }
 0xcc0   : > { %v2365_v40 = vadd.f32 %v3129_v39, %v2946_v34  ;;  %v2359_v41 = vpop.f32.mrb[15].mxu0 }
 0xcc1   : > { %v2360_v42 = vadd.f32 %v2946_v34, %v2359_v41 }
 0xcc2   : > { %v3828_v43 = vadd.f32 %v2365_v40, %v3631_v3 }
 0xcc3   : > { %v3831_v36 = vadd.f32 %v2360_v42, %v3629_v2  ;;  %v2536_v42 = vld [vmem:[%s3622_s27 + $0x30] sm:$0xff] }
 0xcc4   : > { %v2375_v44 = vsel %vm768_vm1, %v3828_v43, 0.0  ;;  %v2379_v3 = vmul.f32 %v3828_v43, %v3828_v43 }
 0xcc5   : > { %2376 = vadd.xlane.f32.xlu1 %v2375_v44  ;;  %v2372_v45 = vsel %vm768_vm1, %v3831_v36, 0.0  ;;  %v2378_v46 = vmul.f32 %v3831_v36, %v3831_v36  ;;  %v2537_v44 = vld [vmem:[%s3622_s27 + $0x38] sm:$0xff]  ;;  %s3986_s27 = sld [smem:[#allocation17_spill]] (!%p2957_p6) }
 0xcc6   : > { %2373 = vadd.xlane.f32.xlu0 %v2372_v45  ;;  %v2383_v2 = vsel %vm768_vm1, %v2379_v3, 0.0  ;;  %v3196_v45 = vpack.c.bf16 %v2537_v44, %v2536_v42 }
 0xcc7   : > { %v2380_v47 = vsel %vm768_vm1, %v2378_v46, 0.0  ;;  %v2951_v46 = vld [vmem:[%s731_s23] ss:$0 sm:$0xff] }
 0xcc8   : > { %3197 = vmatprep.subr.bf16.mxu0 %v3196_v45 }
 0xcc9   : > { %3199 = vmatpush3.bf16.msra.mxu0 %v3196_v45 }
 0xcca   : > { %2381 = vadd.xlane.f32.xlu0 %v2380_v47 }
 0xcce   : > { %2384 = vadd.xlane.f32.xlu0 %v2383_v2 }
 0xd52   : > { %v2377_v63 = vpop.xlane.xlu1 %2376 }
 0xd53   : > { %v2387_v1 = vmul.f32 0.03125, %v2377_v63  ;;  %v2374_v4 = vpop.xlane.xlu0 %2373 }
 0xd54   : > { %v2386_v59 = vmul.f32 0.03125, %v2374_v4 }
 0xd55   : > { %v2389_v5 = vmul.f32 32.0, %v2387_v1  ;;  %v2413_v31 = vsub.f32 %v3828_v43, %v2387_v1 }
 0xd56   : > { %v2388_v7 = vmul.f32 32.0, %v2386_v59  ;;  %v2412_v29 = vsub.f32 %v3831_v36, %v2386_v59 }
 0xd57   : > { %v2382_v8 = vpop.xlane.xlu0 %2381  ;;  %v2391_v11 = vmul.f32 %v2389_v5, %v2387_v1  ;;  %v2421_v38 = vmul.f32 %v2949_v30, %v2413_v31 }
 0xd58   : > { %v2390_v9 = vmul.f32 %v2388_v7, %v2386_v59  ;;  %v2420_v32 = vmul.f32 %v2949_v30, %v2412_v29  ;;  %v2958_v29 = vld [vmem:[%s3986_s27] ss:$0 sm:$0xff] (!%p2957_p6) }
 0xd5a   : > { %v2392_v10 = vsub.f32 %v2382_v8, %v2390_v9 }
 0xd5b   : > { %v2385_v12 = vpop.xlane.xlu0 %2384 }
 0xd5c   : > { %v2394_v13 = vmul.f32 0.032258064, %v2392_v10  ;;  %v2393_v14 = vsub.f32 %v2385_v12, %v2391_v11 }
 0xd5e   : > { %v2396_v15 = vmax.f32 %v2394_v13, 0.0  ;;  %v2395_v16 = vmul.f32 0.032258064, %v2393_v14 }
 0xd60   : > { %3301 = vrsqrt.f32 %v2396_v15  ;;  %v2397_v17 = vmax.f32 %v2395_v16, 0.0  ;;  %vm2400_vm10 = vcmp.eq.f32.partialorder %v2396_v15, inf  ;;  %v2403_v19 = vand.u32 2147483648, %v2396_v15 }
 0xd61   : > { %vm2402_vm11 = vcmp.eq.f32.partialorder %v2396_v15, 0.0 }
 0xd62   : > { %3303 = vrsqrt.f32 %v2397_v17  ;;  %vm2407_vm12 = vcmp.eq.f32.partialorder %v2397_v17, inf  ;;  %v2410_v24 = vand.u32 2147483648, %v2397_v17  ;;  %vm2409_vm13 = vcmp.eq.f32.partialorder %v2397_v17, 0.0 }
 0xd6a   : > { %v3302_v61 = vpop.eup %3301 }
 0xd6b   : > { %v2399_v18 = vmul.f32 %v3302_v61, %v2396_v15 }
 0xd6c   : > { %v3304_v20 = vpop.eup %3303 }
 0xd6d   : > { %v2401_v21 = vsel %vm2400_vm10, %v2396_v15, %v2399_v18  ;;  %v2406_v22 = vmul.f32 %v3304_v20, %v2397_v17 }
 0xd6e   : > { %v2404_v23 = vsel %vm2402_vm11, %v2403_v19, %v2401_v21 }
 0xd6f   : > { %v2422_v25 = vadd.f32 1e-06, %v2404_v23  ;;  %v2408_v26 = vsel %vm2407_vm12, %v2397_v17, %v2406_v22 }
 0xd70   : > { %v2411_v27 = vsel %vm2409_vm13, %v2410_v24, %v2408_v26 }
 0xd71   : > { %3305 = vrcp.f32 %v2422_v25  ;;  %v2423_v28 = vadd.f32 1e-06, %v2411_v27 }
 0xd73   : > { %3307 = vrcp.f32 %v2423_v28 }
 0xd7b   : > { %v3306_v33 = vpop.eup %3305 }
 0xd7c   : > { %v2425_v37 = vmul.f32 %v3306_v33, %v2420_v32  ;;  %v2959_v33 = vld [vmem:[%s3987_s4] ss:$0 sm:$0xff] (!%p2957_p6) }
 0xd7d   : > { %v3308_v34 = vpop.eup %3307 }
 0xd7e   : > { %v2434_v39 = vadd.f32 %v2950_v35, %v2425_v37  ;;  %v2427_v40 = vmul.f32 %v3308_v34, %v2421_v38 }
 0xd80   : > { %3138 = vmatprep.mubr.msk.f32.mxu1 %vm768_vm1, %v2434_v39  ;;  %v2435_v41 = vadd.f32 %v2950_v35, %v2427_v40 }
 0xd82   : > { %3139 = vmatmul.mubr.msk.f32.vlgmr.msra.gmra.mrb[20].mxu1 %vm768_vm1, %v2435_v41 }
 0xe55   : > { %v3140_v47 = vpop.f32.mrb[20].mxu1 }
 0xe56   : > { %v2525_v3 = vadd.f32 %v3140_v47, %v2951_v46  ;;  %v2519_v2 = vpop.f32.mrb[21].mxu1 }
 0xe57   : > { %v2520_v48 = vadd.f32 %v2951_v46, %v2519_v2 }
 0xe58   : > { %v2529_v50 = vmax.f32 %v2525_v3, 0.0 }
 0xe59   : > { %v2528_v49 = vmax.f32 %v2520_v48, 0.0 }
 0xe5b   : > { %3157 = vmatprep.mubr.msk.f32.mxu0 %vm2545_vm14, %v2528_v49 }
 0xe5c   : > { %3158 = vmatmul.mubr.msk.f32.vlgmr.msra.gmra.mrb[16].mxu0 %vm2545_vm14, %v2529_v50 }
 0xf2f   : > { %v3159_v52 = vpop.f32.mrb[16].mxu0  ;;  %2634 = sbr.rel (%p2957_p6) target bundleno = 4085 (0xff5), region = 96 }
 0xf30   : > { %v2624_v53 = vadd.f32 %v3159_v52, %v2954_v51  ;;  %v2618_v54 = vpop.f32.mrb[17].mxu0 }
 0xf31   : > { %v2619_v55 = vadd.f32 %v2954_v51, %v2618_v54 }
 0xf32   : > { %v2628_v57 = vadd.f32 %v2624_v53, %v3828_v43 }
 0xf33   : > { %v2627_v58 = vadd.f32 %v2619_v55, %v3831_v36 }
 0xf34   : > { %2630 = vst.msk [vmem:[#allocation2 + $0x8] sm:$0xff] %vm768_vm1, %v2628_v57  ;;  %v2644_v0 = vmul.f32 (!%p2957_p6), %v2628_v57, %v2628_v57  ;;  %v2640_v62 = vsel (!%p2957_p6), %vm768_vm1, %v2628_v57, 0.0 }
 0xf35   : > { %2629 = vst.msk [vmem:[#allocation2] sm:$0xff] %vm768_vm1, %v2627_v58  ;;  %v2637_v60 = vsel (!%p2957_p6), %vm768_vm1, %v2627_v58, 0.0  ;;  %v2643_v56 = vmul.f32 (!%p2957_p6), %v2627_v58, %v2627_v58 }
 0xf36   : > { %2638 = vadd.xlane.f32.xlu0 %v2637_v60  ;;  %v2648_v43 = vsel %vm768_vm1, %v2644_v0, 0.0 }
 0xf37   : > { %v2645_v6 = vsel %vm768_vm1, %v2643_v56, 0.0 }
 0xf38   : > { %2646 = vadd.xlane.f32.xlu1 %v2645_v6 }
 0xf3a   : > { %2641 = vadd.xlane.f32.xlu0 %v2640_v62 }
 0xf3c   : > { %2649 = vadd.xlane.f32.xlu1 %v2648_v43 }
 0xfc3   : > { %v2639_v36 = vpop.xlane.xlu0 %2638 }
 0xfc4   : > { %v2651_v63 = vmul.f32 0.03125, %v2639_v36 }
 0xfc5   : > { %v2647_v1 = vpop.xlane.xlu1 %2646 }
 0xfc6   : > { %v2653_v4 = vmul.f32 32.0, %v2651_v63  ;;  %v2677_v28 = vsub.f32 %v2627_v58, %v2651_v63 }
 0xfc7   : > { %v2642_v59 = vpop.xlane.xlu0 %2641 }
 0xfc8   : > { %v2652_v5 = vmul.f32 0.03125, %v2642_v59  ;;  %v2655_v7 = vmul.f32 %v2653_v4, %v2651_v63  ;;  %v2685_v30 = vmul.f32 %v2958_v29, %v2677_v28 }
 0xfc9   : > { %v2650_v10 = vpop.xlane.xlu1 %2649 }
 0xfca   : > { %v2654_v8 = vmul.f32 32.0, %v2652_v5  ;;  %v2657_v9 = vsub.f32 %v2647_v1, %v2655_v7  ;;  %v2678_v32 = vsub.f32 %v2628_v57, %v2652_v5 }
 0xfcc   : > { %v2659_v11 = vmul.f32 0.032258064, %v2657_v9  ;;  %v2656_v12 = vmul.f32 %v2654_v8, %v2652_v5  ;;  %v2686_v38 = vmul.f32 %v2958_v29, %v2678_v32 }
 0xfce   : > { %v2661_v13 = vmax.f32 %v2659_v11, 0.0  ;;  %v2658_v14 = vsub.f32 %v2650_v10, %v2656_v12 }
 0xfd0   : > { %3309 = vrsqrt.f32 %v2661_v13  ;;  %v2660_v15 = vmul.f32 0.032258064, %v2658_v14  ;;  %vm2665_vm15 = vcmp.eq.f32.partialorder %v2661_v13, inf  ;;  %v2668_v18 = vand.u32 2147483648, %v2661_v13 }
 0xfd1   : > { %vm2667_vm0 = vcmp.eq.f32.partialorder %v2661_v13, 0.0 }
 0xfd2   : > { %v2662_v16 = vmax.f32 %v2660_v15, 0.0 }
 0xfd4   : > { %3311 = vrsqrt.f32 %v2662_v16  ;;  %vm2672_vm2 = vcmp.eq.f32.partialorder %v2662_v16, inf  ;;  %v2675_v24 = vand.u32 2147483648, %v2662_v16  ;;  %vm2674_vm3 = vcmp.eq.f32.partialorder %v2662_v16, 0.0 }
 0xfda   : > { %v3310_v17 = vpop.eup %3309 }
 0xfdb   : > { %v2664_v61 = vmul.f32 %v3310_v17, %v2661_v13 }
 0xfdd   : > { %v2666_v19 = vsel %vm2665_vm15, %v2661_v13, %v2664_v61 }
 0xfde   : > { %v2669_v20 = vsel %vm2667_vm0, %v2668_v18, %v2666_v19  ;;  %v3312_v21 = vpop.eup %3311 }
 0xfdf   : > { %v2687_v22 = vadd.f32 1e-06, %v2669_v20  ;;  %v2671_v23 = vmul.f32 %v3312_v21, %v2662_v16 }
 0xfe1   : > { %3313 = vrcp.f32 %v2687_v22  ;;  %v2673_v25 = vsel %vm2672_vm2, %v2662_v16, %v2671_v23 }
 0xfe2   : > { %v2676_v26 = vsel %vm2674_vm3, %v2675_v24, %v2673_v25 }
 0xfe3   : > { %v2688_v27 = vadd.f32 1e-06, %v2676_v26 }
 0xfe5   : > { %3315 = vrcp.f32 %v2688_v27 }
 0xfeb   : > { %v3314_v31 = vpop.eup %3313 }
 0xfec   : > { %v2690_v35 = vmul.f32 %v3314_v31, %v2685_v30 }
 0xfee   : > { %v2699_v37 = vadd.f32 %v2959_v33, %v2690_v35 }
 0xfef   : > { %v3316_v34 = vpop.eup %3315 }
 0xff0   : > { %2701 = vst.msk [vmem:[#allocation6] sm:$0xff] %vm768_vm1, %v2699_v37  ;;  %v2692_v39 = vmul.f32 %v3316_v34, %v2686_v38 }
 0xff2   : > { %v2700_v40 = vadd.f32 %v2959_v33, %v2692_v39 }
 0xff4   : > { %2702 = vst.msk [vmem:[#allocation6 + $0x8] sm:$0xff] %vm768_vm1, %v2700_v40 }
 0xff5 PF: > { %s3988_s16 = sld [smem:[#allocation10_spill]]  ;;  %s3422_s17 = smov [#allocation6]  }
 0xff6   : > { %s2712_s14 = sshll.u32 %s3422_s17, 4  ;;  %s2713_s14 = int_to_ptr.vmem [resolvable:$true] %s2712_s14 }
 0xff7   : > { %s3345_s18 = scalar_lea.vmem %s2713_s14, 256  ;;  %p3352_p13 = scmp.lt.s32.totalorder %s2713_s14, %s2713_s14 }
 0xff8   : > { %p3346_p10 = scmp.ne.s32.totalorder %s2713_s14, %s3345_s18  ;;  %p3353_p0 = scmp.lt.s32.totalorder %s3345_s18, %s3345_s18 }
 0xffa   : > { %p3354_p1 = por %p3353_p0, %p3352_p13 }
 0xffb   : > { %s3989_s25 = sadd.s32 4294967295, %s3988_s16  }
 0xffc   : > { %p3898_p8 = scmp.eq.s32.totalorder %s3989_s25, 1 }
 0xffe   : > { %p3347_p11 = pnand %p3346_p10, %p3898_p8 }
0x1000   : > { %p3348_p12 = pneg %p3347_p11 }
0x1002   : > { %p3355_p2 = pnand %p3354_p1, %p3348_p12 }
0x1004   : > { %3358 = shalt.err (!%p3355_p2)
}
0x1005   : > { %s3991_s15 = sld [smem:[#allocation19_spill]] }
0x100b   : > { %s3359_s2 = scalar_lea.hbm %s3991_s15, 256 }
0x100c   : > { %p3360_p5 = scmp.ne.s32.totalorder %s3991_s15, %s3359_s2  ;;  %p3365_p3 = scmp.lt.u32.totalorder %s3359_s2, %s3991_s15 }
0x100e   : > { %p3361_p7 = pnand %p3360_p5, %p3898_p8 }
0x1010   : > { %p3362_p9 = pneg %p3361_p7 }
0x1012   : > { %p3367_p4 = pnand %p3365_p3, %p3362_p9 }
0x1014   : > { %3370 = shalt.err (!%p3367_p4)
}
0x1015   : > { %s3423_s22 = smov 128  }
0x1016   : > { %3205 = dma.vmem_to_hbm [thread:$0]  (%p3898_p8), %s2713_s14, 256, %s3991_s15, [#allocation5], %s3423_s22, %s3423_s22, %s3419_s19  }
0x1017   : > { %3388 = dma.done.wait (%p3898_p8), [#allocation5], 256  }
0x1018   : > { %3390 = vsyncadd (%p3898_p8), [#allocation5], 4294967040 }
0x1019 PF: > { %s3992_s1 = sld [smem:[#allocation10_spill]]  ;;  %s3993_s21 = sld [smem:[#allocation9_spill]] }
0x101a   : > { %s3994_s22 = sld [smem:[#allocation11_spill]] }
0x101f   : > { %s28_s23 = sadd.s32 1, %s3992_s1  }
0x1020   : > { %p25_p6 = scmp.ge.s32.totalorder %s28_s23, 4  }
0x1022   :  { %27 = sbr.rel (!%p25_p6) target bundleno = 11 (0xb), region = 162 }
0x1029   :  { %2728 = vsyncpa [#allocation4], 1 }
0x102a   :  { %2730 = vsyncpa [#allocation4 + $0x1], 1 }
0x102b   :  { %2731 = vsyncpa [#allocation5], 1 }
0x102c   :  { %2733 = vsyncpa [#allocation5 + $0x1], 1 }

</bundles_post_ra>
